<compile_context>
chip_gen: v5e
topology: v5e:2x2
jax: 0.10.0
libtpu: 0.0.40
codegen_flags: <defaults>
</compile_context>

<pallas_src>
import functools
import math

import jax
import jax.numpy as jnp
from jax.experimental import pallas as pl
from jax.experimental.pallas import tpu as pltpu

LN_EPS = 1e-5                       # torch.nn.LayerNorm default
_INV_SQRT2 = 1.0 / math.sqrt(2.0)


def _vmem_limit_bytes():
    try:
        cap = pltpu.get_tpu_info().vmem_capacity_bytes
    except Exception:
        cap = 128 * 1024 * 1024
    # ~100 MiB on 128-MiB parts (v5e/v6e), ~54 MiB on 64-MiB parts (v7x).
    return min(int(cap * 0.85), 100 * 1024 * 1024)


def _layernorm(x, w, b):
    mu = jnp.mean(x, axis=-1, keepdims=True)
    xc = x - mu
    var = jnp.mean(xc * xc, axis=-1, keepdims=True)
    return xc * jax.lax.rsqrt(var + LN_EPS) * w + b


def _gelu_exact(x):
    return 0.5 * x * (1.0 + jax.lax.erf(x * _INV_SQRT2))


# ----------------------------- embedding kernel -----------------------------

def embed_kernel(tok_ref, pos_ref, mask_ref, lnw_ref, lnb_ref, o_ref):
    # embedded = LayerNorm(token_emb + pos_emb); then zero padded rows.
    x = tok_ref[0] + pos_ref[0]                       # (S, E) f32
    y = _layernorm(x, lnw_ref[...], lnb_ref[...])
    o_ref[0] = y * (1.0 - mask_ref[0])                # mask_ref[0]: (S, 1)


def run_embed(tok_emb, pos_emb, pad_mask, lnw, lnb, *, vmem_limit):
    B, S, E = tok_emb.shape
    mask3 = pad_mask.reshape(B, S, 1).astype(jnp.float32)
    return pl.pallas_call(
        embed_kernel,
        out_shape=jax.ShapeDtypeStruct((B, S, E), jnp.float32),
        grid=(B,),
        in_specs=[
            pl.BlockSpec((1, S, E), lambda b: (b, 0, 0)),
            pl.BlockSpec((1, S, E), lambda b: (b, 0, 0)),
            pl.BlockSpec((1, S, 1), lambda b: (b, 0, 0)),
            pl.BlockSpec((1, E), lambda b: (0, 0)),
            pl.BlockSpec((1, E), lambda b: (0, 0)),
        ],
        out_specs=pl.BlockSpec((1, S, E), lambda b: (b, 0, 0)),
        compiler_params=pltpu.CompilerParams(
            dimension_semantics=("parallel",),
            vmem_limit_bytes=vmem_limit),
    )(tok_emb, pos_emb, mask3, lnw, lnb)


# --------------------------- stacked encoder layers --------------------------

def encoder_layers_kernel(x_ref, mask_ref,
                          wq_ref, wk_ref, wv_ref, bq_ref, bk_ref, bv_ref,
                          wo_ref, bo_ref, ln1w_ref, ln1b_ref,
                          w1_ref, b1_ref, w2_ref, b2_ref,
                          ln2w_ref, ln2b_ref, o_ref,
                          *, num_heads, head_dim, scale):
    l = pl.program_id(1)

    # Layer 0: seed the resident activation (the output block is carried across
    # the layer axis, so it serves as the layer-to-layer activation buffer).
    @pl.when(l == 0)
    def _():
        o_ref[...] = x_ref[...]

    x = o_ref[0]                                    # (S, E) f32 activation
    xb = x.astype(jnp.bfloat16)
    neg = mask_ref[0] * (-1e30)                     # (1, S) key-padding bias, f32

    # ---- self-attention: full-width projections (bf16 MXU, f32 accum) ----
    q = (jnp.dot(xb, wq_ref[0], preferred_element_type=jnp.float32)
         + bq_ref[0]) * scale
    k = jnp.dot(xb, wk_ref[0], preferred_element_type=jnp.float32) + bk_ref[0]
    v = jnp.dot(xb, wv_ref[0], preferred_element_type=jnp.float32) + bv_ref[0]
    qb = q.astype(jnp.bfloat16)
    kb = k.astype(jnp.bfloat16)
    vb = v.astype(jnp.bfloat16)

    ctx = []
    for h in range(num_heads):
        sl = slice(h * head_dim, (h + 1) * head_dim)
        s = jax.lax.dot_general(qb[:, sl], kb[:, sl], (((1,), (1,)), ((), ())),
                                preferred_element_type=jnp.float32)   # (S, S)
        s = s + neg
        s = s - jnp.max(s, axis=-1, keepdims=True)
        p = jnp.exp(s)
        p = p * pl.reciprocal(jnp.sum(p, axis=-1, keepdims=True), approx=True)
        ctx.append(jnp.dot(p.astype(jnp.bfloat16), vb[:, sl],
                           preferred_element_type=jnp.float32))       # (S, hd)
    ctx = jnp.concatenate(ctx, axis=-1).astype(jnp.bfloat16)          # (S, E)

    attn = jnp.dot(ctx, wo_ref[0], preferred_element_type=jnp.float32) + bo_ref[0]

    # ---- post-LN block (normalize_before=False) + residual MLP ----
    y = _layernorm(x + attn, ln1w_ref[0], ln1b_ref[0])                # (S, E) f32
    h1 = jnp.dot(y.astype(jnp.bfloat16), w1_ref[0],
                 preferred_element_type=jnp.float32) + b1_ref[0]      # (S, F) f32
    h1 = _gelu_exact(h1)
    h2 = jnp.dot(h1.astype(jnp.bfloat16), w2_ref[0],
                 preferred_element_type=jnp.float32) + b2_ref[0]
    o_ref[0] = _layernorm(y + h2, ln2w_ref[0], ln2b_ref[0])


_LAYER_PARAM_ORDER = ("wq", "wk", "wv", "bq", "bk", "bv", "wo", "bo",
                      "ln1w", "ln1b", "w1", "b1", "w2", "b2", "ln2w", "ln2b")


def run_encoder_layers(x, pad_mask, layers, num_heads, *, vmem_limit):
    B, S, E = x.shape
    L = layers["wq"].shape[0]
    hd = E // num_heads
    scale = 1.0 / math.sqrt(hd)     # torchtext default scaling
    mask3 = pad_mask.reshape(B, 1, S).astype(jnp.float32)
    weights = [layers[name] for name in _LAYER_PARAM_ORDER]

    def layer_spec(a):
        tail = a.shape[1:]
        return pl.BlockSpec((1,) + tail,
                            lambda b, l, _n=len(tail): (l,) + (0,) * _n)

    in_specs = [
        pl.BlockSpec((1, S, E), lambda b, l: (b, 0, 0)),   # layer-0 activations
        pl.BlockSpec((1, 1, S), lambda b, l: (b, 0, 0)),   # key-padding mask
    ] + [layer_spec(a) for a in weights]

    kernel = functools.partial(encoder_layers_kernel,
                               num_heads=num_heads, head_dim=hd, scale=scale)
    return pl.pallas_call(
        kernel,
        out_shape=jax.ShapeDtypeStruct((B, S, E), jnp.float32),
        grid=(B, L),
        in_specs=in_specs,
        out_specs=pl.BlockSpec((1, S, E), lambda b, l: (b, 0, 0)),
        compiler_params=pltpu.CompilerParams(
            dimension_semantics=("parallel", "arbitrary"),
            vmem_limit_bytes=vmem_limit),
    )(x, mask3, *weights)


# ------------------------------ parameters ----------------------------------

def init_params(key, cfg):
    E = cfg["embedding_dim"]
    F = cfg["ffn_dimension"]
    V = cfg["vocab_size"]
    P = cfg["max_seq_len"]
    pad = cfg["padding_idx"]
    L = cfg["num_encoder_layers"]

    def nrm(k, shape, s=0.02):
        return s * jax.random.normal(k, shape, jnp.float32)

    keys = iter(jax.random.split(key, 4 + 12 * L))
    tok_table = nrm(next(keys), (V, E)).at[pad].set(0.0)   # nn.Embedding padding row = 0
    pos_table = nrm(next(keys), (P, E)).at[pad].set(0.0)
    emb_lnw = 1.0 + nrm(next(keys), (1, E))
    emb_lnb = nrm(next(keys), (1, E))

    acc = {name: [] for name in _LAYER_PARAM_ORDER}
    for _ in range(L):
        in_w = nrm(next(keys), (3 * E, E))   # torchtext input_projection.weight (3E, E)
        in_b = nrm(next(keys), (3 * E,))
        out_w = nrm(next(keys), (E, E))      # output_projection.weight
        out_b = nrm(next(keys), (E,))
        ln1w = 1.0 + nrm(next(keys), (E,)); ln1b = nrm(next(keys), (E,))
        l1w = nrm(next(keys), (F, E)); l1b = nrm(next(keys), (F,))
        l2w = nrm(next(keys), (E, F)); l2b = nrm(next(keys), (E,))
        ln2w = 1.0 + nrm(next(keys), (E,)); ln2b = nrm(next(keys), (E,))

        acc["wq"].append(in_w[:E].T)            # x @ wq == x @ Wq^T
        acc["wk"].append(in_w[E:2 * E].T)
        acc["wv"].append(in_w[2 * E:].T)
        acc["bq"].append(in_b[:E].reshape(1, E))
        acc["bk"].append(in_b[E:2 * E].reshape(1, E))
        acc["bv"].append(in_b[2 * E:].reshape(1, E))
        acc["wo"].append(out_w.T)
        acc["bo"].append(out_b.reshape(1, E))
        acc["ln1w"].append(ln1w.reshape(1, E)); acc["ln1b"].append(ln1b.reshape(1, E))
        acc["w1"].append(l1w.T); acc["b1"].append(l1b.reshape(1, F))
        acc["w2"].append(l2w.T); acc["b2"].append(l2b.reshape(1, E))
        acc["ln2w"].append(ln2w.reshape(1, E)); acc["ln2b"].append(ln2b.reshape(1, E))

    bf16_names = {"wq", "wk", "wv", "wo", "w1", "w2"}   # MXU operands in bf16
    layers = {}
    for name, mats in acc.items():
        stacked = jnp.stack(mats, axis=0)
        layers[name] = stacked.astype(jnp.bfloat16) if name in bf16_names else stacked

    return dict(tok_table=tok_table, pos_table=pos_table,
                emb_lnw=emb_lnw, emb_lnb=emb_lnb, layers=layers)


# ------------------------------- forward ------------------------------------

def _embed_inputs(tokens, params, cfg):
    """Token/position gathers + padding mask (plain-JAX glue, shared w/ ref)."""
    pad = cfg["padding_idx"]
    nonpad = (tokens != pad).astype(jnp.int32)
    positions = jnp.cumsum(nonpad, axis=1) * nonpad + pad   # torchtext _make_positions
    tok_emb = jnp.take(params["tok_table"], tokens, axis=0)
    pos_emb = jnp.take(params["pos_table"], positions, axis=0)
    pad_mask = (tokens == pad).astype(jnp.float32)
    return tok_emb, pos_emb, pad_mask


def roberta_forward(tokens, params, cfg):
    """RobertaModel.forward with head=None, masked_tokens=None -> (B, S, E)."""
    pad = cfg["padding_idx"]
    B, S = tokens.shape
    # positions = cumsum(nonpad)+pad can reach S+pad; must fit the table.
    assert S + pad < cfg["max_seq_len"], "sequence too long for positional table"

    tok_emb, pos_emb, pad_mask = _embed_inputs(tokens, params, cfg)
    vlim = _vmem_limit_bytes()
    x = run_embed(tok_emb, pos_emb, pad_mask,
                  params["emb_lnw"], params["emb_lnb"], vmem_limit=vlim)
    x = run_encoder_layers(x, pad_mask, params["layers"],
                           cfg["num_attention_heads"], vmem_limit=vlim)
    # TransformerEncoder returns T x B x C; RobertaEncoder transposes back to
    # B x T x C, which is the layout we already carry.
    # TODO(synk): masked_tokens boolean row-select produces dynamic shapes; None path only.
    return x


# ---------------------------- pure-JAX reference ----------------------------

def roberta_reference(tokens, params, cfg):
    """Same numerics in plain JAX (bf16 matmuls, f32 stats) for validation."""
    tok_emb, pos_emb, pad_mask = _embed_inputs(tokens, params, cfg)
    x = _layernorm(tok_emb + pos_emb, params["emb_lnw"], params["emb_lnb"])
    x = x * (1.0 - pad_mask[..., None])

    layers = params["layers"]
    B, S, E = x.shape
    H = cfg["num_attention_heads"]
    hd = E // H
    scale = 1.0 / math.sqrt(hd)
    L = layers["wq"].shape[0]
    neg = pad_mask.reshape(B, 1, 1, S) * (-1e30)

    def mm(a, w):
        return jnp.einsum("bse,ef->bsf", a.astype(jnp.bfloat16), w,
                          preferred_element_type=jnp.float32)

    for li in range(L):
        q = (mm(x, layers["wq"][li]) + layers["bq"][li]) * scale
        k = mm(x, layers["wk"][li]) + layers["bk"][li]
        v = mm(x, layers["wv"][li]) + layers["bv"][li]
        qh = q.reshape(B, S, H, hd).astype(jnp.bfloat16)
        kh = k.reshape(B, S, H, hd).astype(jnp.bfloat16)
        vh = v.reshape(B, S, H, hd).astype(jnp.bfloat16)
        s = jnp.einsum("bqhd,bkhd->bhqk", qh, kh,
                       preferred_element_type=jnp.float32) + neg
        s = s - jnp.max(s, axis=-1, keepdims=True)
        p = jnp.exp(s)
        p = p / jnp.sum(p, axis=-1, keepdims=True)
        ctx = jnp.einsum("bhqk,bkhd->bqhd", p.astype(jnp.bfloat16), vh,
                         preferred_element_type=jnp.float32).reshape(B, S, E)
        attn = mm(ctx, layers["wo"][li]) + layers["bo"][li]
        y = _layernorm(x + attn, layers["ln1w"][li], layers["ln1b"][li])
        h1 = _gelu_exact(mm(y, layers["w1"][li]) + layers["b1"][li])
        h2 = mm(h1, layers["w2"][li]) + layers["b2"][li]
        x = _layernorm(y + h2, layers["ln2w"][li], layers["ln2b"][li])
    return x


if __name__ == "__main__":
    cfg = dict(vocab_size=100, embedding_dim=32, ffn_dimension=64, padding_idx=1,
               max_seq_len=64, num_attention_heads=4, num_encoder_layers=2)
    key = jax.random.PRNGKey(0)
    pkey, tkey = jax.random.split(key)
    params = init_params(pkey, cfg)

    B, S = 2, 8
    tokens = jax.random.randint(tkey, (B, S), 2, cfg["vocab_size"], dtype=jnp.int32)
    tokens = tokens.at[1, 5:].set(cfg["padding_idx"])  # some padding in sequence 1

    fwd = jax.jit(lambda t: roberta_forward(t, params, cfg))
    out = fwd(tokens)
    jax.block_until_ready(out)

    assert out.shape == (B, S, cfg["embedding_dim"])
    assert bool(jnp.all(jnp.isfinite(out)))

    ref = roberta_reference(tokens, params, cfg)
    err = float(jnp.max(jnp.abs(out - ref)))
    assert err < 5e-2, f"kernel vs pure-JAX reference mismatch: max |diff| = {err}"
    print("KERNEL_OK")
</pallas_src>

<mosaic_0001>
module attributes {stable_mosaic.version = 11 : i64} {
  func.func @embed_kernel(%arg0: i32, %arg1: memref<1x8x32xf32, #tpu.memory_space<vmem>>, %arg2: memref<1x8x32xf32, #tpu.memory_space<vmem>>, %arg3: memref<1x8x1xf32, #tpu.memory_space<vmem>>, %arg4: memref<1x32xf32, #tpu.memory_space<vmem>>, %arg5: memref<1x32xf32, #tpu.memory_space<vmem>>, %arg6: memref<1x8x32xf32, #tpu.memory_space<vmem>>) attributes {dimension_semantics = [#tpu.dimension_semantics<parallel>], iteration_bounds = array<i64: 2>, scalar_prefetch = 0 : i64, scratch_operands = 0 : i64, tpu.core_type = #tpu.core_type<tc>, window_params = [{transform_indices = @transform_0, window_bounds = array<i64: 1, 8, 32>}, {transform_indices = @transform_1, window_bounds = array<i64: 1, 8, 32>}, {transform_indices = @transform_2, window_bounds = array<i64: 1, 8, 1>}, {pipeline_mode = #tpu.pipeline_mode<synchronous>, transform_indices = @transform_3, window_bounds = array<i64: 1, 32>}, {pipeline_mode = #tpu.pipeline_mode<synchronous>, transform_indices = @transform_4, window_bounds = array<i64: 1, 32>}, {transform_indices = @transform_5, window_bounds = array<i64: 1, 8, 32>}]} {
    %c0 = arith.constant 0 : index
    %c0_0 = arith.constant 0 : index
    %c0_1 = arith.constant 0 : index
    %0 = vector.load %arg1[%c0, %c0_0, %c0_1] : memref<1x8x32xf32, #tpu.memory_space<vmem>>, vector<1x8x32xf32>
    %1 = vector.shape_cast %0 : vector<1x8x32xf32> to vector<8x32xf32>
    %c0_2 = arith.constant 0 : index
    %c0_3 = arith.constant 0 : index
    %c0_4 = arith.constant 0 : index
    %2 = vector.load %arg2[%c0_2, %c0_3, %c0_4] : memref<1x8x32xf32, #tpu.memory_space<vmem>>, vector<1x8x32xf32>
    %3 = vector.shape_cast %2 : vector<1x8x32xf32> to vector<8x32xf32>
    %4 = arith.addf %1, %3 : vector<8x32xf32>
    %c0_5 = arith.constant 0 : index
    %c0_6 = arith.constant 0 : index
    %5 = vector.load %arg4[%c0_5, %c0_6] : memref<1x32xf32, #tpu.memory_space<vmem>>, vector<1x32xf32>
    %c0_7 = arith.constant 0 : index
    %c0_8 = arith.constant 0 : index
    %6 = vector.load %arg5[%c0_7, %c0_8] : memref<1x32xf32, #tpu.memory_space<vmem>>, vector<1x32xf32>
    %cst = arith.constant dense<0.000000e+00> : vector<8xf32>
    %7 = vector.multi_reduction <add>, %4, %cst [1] : vector<8x32xf32> to vector<8xf32>
    %8 = vector.shape_cast %7 : vector<8xf32> to vector<8x1xf32>
    %cst_9 = arith.constant 3.200000e+01 : f32
    %9 = vector.broadcast %cst_9 : f32 to vector<8x1xf32>
    %10 = arith.divf %8, %9 : vector<8x1xf32>
    %11 = vector.broadcast %10 : vector<8x1xf32> to vector<8x32xf32>
    %12 = arith.subf %4, %11 : vector<8x32xf32>
    %13 = arith.mulf %12, %12 : vector<8x32xf32>
    %cst_10 = arith.constant dense<0.000000e+00> : vector<8xf32>
    %14 = vector.multi_reduction <add>, %13, %cst_10 [1] : vector<8x32xf32> to vector<8xf32>
    %15 = vector.shape_cast %14 : vector<8xf32> to vector<8x1xf32>
    %cst_11 = arith.constant 3.200000e+01 : f32
    %16 = vector.broadcast %cst_11 : f32 to vector<8x1xf32>
    %17 = arith.divf %15, %16 : vector<8x1xf32>
    %cst_12 = arith.constant 9.99999974E-6 : f32
    %18 = vector.broadcast %cst_12 : f32 to vector<8x1xf32>
    %19 = arith.addf %17, %18 : vector<8x1xf32>
    %20 = math.rsqrt %19 : vector<8x1xf32>
    %21 = vector.broadcast %20 : vector<8x1xf32> to vector<8x32xf32>
    %22 = arith.mulf %12, %21 : vector<8x32xf32>
    %23 = vector.broadcast %5 : vector<1x32xf32> to vector<8x32xf32>
    %24 = arith.mulf %22, %23 : vector<8x32xf32>
    %25 = vector.broadcast %6 : vector<1x32xf32> to vector<8x32xf32>
    %26 = arith.addf %24, %25 : vector<8x32xf32>
    %c0_13 = arith.constant 0 : index
    %c0_14 = arith.constant 0 : index
    %c0_15 = arith.constant 0 : index
    %27 = vector.load %arg3[%c0_13, %c0_14, %c0_15] : memref<1x8x1xf32, #tpu.memory_space<vmem>>, vector<1x8x1xf32>
    %28 = vector.shape_cast %27 : vector<1x8x1xf32> to vector<8x1xf32>
    %cst_16 = arith.constant 1.000000e+00 : f32
    %29 = vector.broadcast %cst_16 : f32 to vector<8x1xf32>
    %30 = arith.subf %29, %28 : vector<8x1xf32>
    %31 = vector.broadcast %30 : vector<8x1xf32> to vector<8x32xf32>
    %32 = arith.mulf %26, %31 : vector<8x32xf32>
    %c0_17 = arith.constant 0 : index
    %c0_18 = arith.constant 0 : index
    %c0_19 = arith.constant 0 : index
    %33 = vector.load %arg6[%c0_17, %c0_18, %c0_19] : memref<1x8x32xf32, #tpu.memory_space<vmem>>, vector<1x8x32xf32>
    %34 = vector.shape_cast %33 : vector<1x8x32xf32> to vector<8x32xf32>
    %35 = vector.shape_cast %32 : vector<8x32xf32> to vector<1x8x32xf32>
    tpu.vector_store %arg6[%c0_17, %c0_18, %c0_19], %35 {strides = array<i32>} : memref<1x8x32xf32, #tpu.memory_space<vmem>>, vector<1x8x32xf32>,
    return
  }
  func.func @transform_0(%arg0: i32) -> (i32, i32, i32) {
    %c0_i32 = arith.constant 0 : i32
    %c0_i32_0 = arith.constant 0 : i32
    %c0_i32_1 = arith.constant 0 : i32
    return %arg0, %c0_i32, %c0_i32_0 : i32, i32, i32
  }
  func.func @transform_1(%arg0: i32) -> (i32, i32, i32) {
    %c0_i32 = arith.constant 0 : i32
    %c0_i32_0 = arith.constant 0 : i32
    %c0_i32_1 = arith.constant 0 : i32
    return %arg0, %c0_i32, %c0_i32_0 : i32, i32, i32
  }
  func.func @transform_2(%arg0: i32) -> (i32, i32, i32) {
    %c0_i32 = arith.constant 0 : i32
    %c0_i32_0 = arith.constant 0 : i32
    %c0_i32_1 = arith.constant 0 : i32
    return %arg0, %c0_i32, %c0_i32_0 : i32, i32, i32
  }
  func.func @transform_3(%arg0: i32) -> (i32, i32) {
    %c0_i32 = arith.constant 0 : i32
    %c0_i32_0 = arith.constant 0 : i32
    %c0_i32_1 = arith.constant 0 : i32
    return %c0_i32, %c0_i32_0 : i32, i32
  }
  func.func @transform_4(%arg0: i32) -> (i32, i32) {
    %c0_i32 = arith.constant 0 : i32
    %c0_i32_0 = arith.constant 0 : i32
    %c0_i32_1 = arith.constant 0 : i32
    return %c0_i32, %c0_i32_0 : i32, i32
  }
  func.func @transform_5(%arg0: i32) -> (i32, i32, i32) {
    %c0_i32 = arith.constant 0 : i32
    %c0_i32_0 = arith.constant 0 : i32
    %c0_i32_1 = arith.constant 0 : i32
    return %arg0, %c0_i32, %c0_i32_0 : i32, i32, i32
  }
}

module attributes {stable_mosaic.version = 11 : i64} {
  func.func @encoder_layers_kernel(%arg0: i32, %arg1: i32, %arg2: memref<1x8x32xf32, #tpu.memory_space<vmem>>, %arg3: memref<1x1x8xf32, #tpu.memory_space<vmem>>, %arg4: memref<1x32x32xbf16, #tpu.memory_space<vmem>>, %arg5: memref<1x32x32xbf16, #tpu.memory_space<vmem>>, %arg6: memref<1x32x32xbf16, #tpu.memory_space<vmem>>, %arg7: memref<1x1x32xf32, #tpu.memory_space<vmem>>, %arg8: memref<1x1x32xf32, #tpu.memory_space<vmem>>, %arg9: memref<1x1x32xf32, #tpu.memory_space<vmem>>, %arg10: memref<1x32x32xbf16, #tpu.memory_space<vmem>>, %arg11: memref<1x1x32xf32, #tpu.memory_space<vmem>>, %arg12: memref<1x1x32xf32, #tpu.memory_space<vmem>>, %arg13: memref<1x1x32xf32, #tpu.memory_space<vmem>>, %arg14: memref<1x32x64xbf16, #tpu.memory_space<vmem>>, %arg15: memref<1x1x64xf32, #tpu.memory_space<vmem>>, %arg16: memref<1x64x32xbf16, #tpu.memory_space<vmem>>, %arg17: memref<1x1x32xf32, #tpu.memory_space<vmem>>, %arg18: memref<1x1x32xf32, #tpu.memory_space<vmem>>, %arg19: memref<1x1x32xf32, #tpu.memory_space<vmem>>, %arg20: memref<1x8x32xf32, #tpu.memory_space<vmem>>) attributes {dimension_semantics = [#tpu.dimension_semantics<parallel>, #tpu.dimension_semantics<arbitrary>], iteration_bounds = array<i64: 2, 2>, scalar_prefetch = 0 : i64, scratch_operands = 0 : i64, tpu.core_type = #tpu.core_type<tc>, window_params = [{transform_indices = @transform_0, window_bounds = array<i64: 1, 8, 32>}, {transform_indices = @transform_1, window_bounds = array<i64: 1, 1, 8>}, {transform_indices = @transform_2, window_bounds = array<i64: 1, 32, 32>}, {transform_indices = @transform_3, window_bounds = array<i64: 1, 32, 32>}, {transform_indices = @transform_4, window_bounds = array<i64: 1, 32, 32>}, {transform_indices = @transform_5, window_bounds = array<i64: 1, 1, 32>}, {transform_indices = @transform_6, window_bounds = array<i64: 1, 1, 32>}, {transform_indices = @transform_7, window_bounds = array<i64: 1, 1, 32>}, {transform_indices = @transform_8, window_bounds = array<i64: 1, 32, 32>}, {transform_indices = @transform_9, window_bounds = array<i64: 1, 1, 32>}, {transform_indices = @transform_10, window_bounds = array<i64: 1, 1, 32>}, {transform_indices = @transform_11, window_bounds = array<i64: 1, 1, 32>}, {transform_indices = @transform_12, window_bounds = array<i64: 1, 32, 64>}, {transform_indices = @transform_13, window_bounds = array<i64: 1, 1, 64>}, {transform_indices = @transform_14, window_bounds = array<i64: 1, 64, 32>}, {transform_indices = @transform_15, window_bounds = array<i64: 1, 1, 32>}, {transform_indices = @transform_16, window_bounds = array<i64: 1, 1, 32>}, {transform_indices = @transform_17, window_bounds = array<i64: 1, 1, 32>}, {transform_indices = @transform_18, window_bounds = array<i64: 1, 8, 32>}]} {
    %c0_i32 = arith.constant 0 : i32
    %0 = arith.cmpi eq, %arg1, %c0_i32 : i32
    %1 = arith.extui %0 : i1 to i32
    %c0_i32_0 = arith.constant 0 : i32
    %2 = arith.cmpi ne, %1, %c0_i32_0 : i32
    scf.if %2 {
      %c0_93 = arith.constant 0 : index
      %c0_94 = arith.constant 0 : index
      %c0_95 = arith.constant 0 : index
      %194 = vector.load %arg2[%c0_93, %c0_94, %c0_95] : memref<1x8x32xf32, #tpu.memory_space<vmem>>, vector<1x8x32xf32>
      %c0_96 = arith.constant 0 : index
      %c0_97 = arith.constant 0 : index
      %c0_98 = arith.constant 0 : index
      %195 = vector.load %arg20[%c0_96, %c0_97, %c0_98] : memref<1x8x32xf32, #tpu.memory_space<vmem>>, vector<1x8x32xf32>
      tpu.vector_store %arg20[%c0_96, %c0_97, %c0_98], %194 {strides = array<i32>} : memref<1x8x32xf32, #tpu.memory_space<vmem>>, vector<1x8x32xf32>,
    } else {
    }
    %c0 = arith.constant 0 : index
    %c0_1 = arith.constant 0 : index
    %c0_2 = arith.constant 0 : index
    %3 = vector.load %arg20[%c0, %c0_1, %c0_2] : memref<1x8x32xf32, #tpu.memory_space<vmem>>, vector<1x8x32xf32>
    %4 = vector.shape_cast %3 : vector<1x8x32xf32> to vector<8x32xf32>
    %5 = arith.truncf %4 : vector<8x32xf32> to vector<8x32xbf16>
    %c0_3 = arith.constant 0 : index
    %c0_4 = arith.constant 0 : index
    %c0_5 = arith.constant 0 : index
    %6 = vector.load %arg3[%c0_3, %c0_4, %c0_5] : memref<1x1x8xf32, #tpu.memory_space<vmem>>, vector<1x1x8xf32>
    %7 = vector.shape_cast %6 : vector<1x1x8xf32> to vector<1x8xf32>
    %cst = arith.constant -1.000000e+30 : f32
    %8 = vector.broadcast %cst : f32 to vector<1x8xf32>
    %9 = arith.mulf %7, %8 : vector<1x8xf32>
    %c0_6 = arith.constant 0 : index
    %c0_7 = arith.constant 0 : index
    %c0_8 = arith.constant 0 : index
    %10 = vector.load %arg4[%c0_6, %c0_7, %c0_8] : memref<1x32x32xbf16, #tpu.memory_space<vmem>>, vector<1x32x32xbf16>
    %11 = vector.shape_cast %10 : vector<1x32x32xbf16> to vector<32x32xbf16>
    %cst_9 = arith.constant dense<0.000000e+00> : vector<8x32xf32>
    %12 = tpu.matmul %5, %11, %cst_9 {dimension_numbers = #tpu.dot_dimension_numbers<[1], [0], [0], [1], [0, 0, 1, 1], [], []>} : vector<8x32xbf16>, vector<32x32xbf16>, vector<8x32xf32> -> vector<8x32xf32>
    %c0_10 = arith.constant 0 : index
    %c0_11 = arith.constant 0 : index
    %c0_12 = arith.constant 0 : index
    %13 = vector.load %arg7[%c0_10, %c0_11, %c0_12] : memref<1x1x32xf32, #tpu.memory_space<vmem>>, vector<1x1x32xf32>
    %14 = vector.shape_cast %13 : vector<1x1x32xf32> to vector<1x32xf32>
    %15 = vector.broadcast %14 : vector<1x32xf32> to vector<8x32xf32>
    %16 = arith.addf %12, %15 : vector<8x32xf32>
    %cst_13 = arith.constant 0.353553385 : f32
    %17 = vector.broadcast %cst_13 : f32 to vector<8x32xf32>
    %18 = arith.mulf %16, %17 : vector<8x32xf32>
    %c0_14 = arith.constant 0 : index
    %c0_15 = arith.constant 0 : index
    %c0_16 = arith.constant 0 : index
    %19 = vector.load %arg5[%c0_14, %c0_15, %c0_16] : memref<1x32x32xbf16, #tpu.memory_space<vmem>>, vector<1x32x32xbf16>
    %20 = vector.shape_cast %19 : vector<1x32x32xbf16> to vector<32x32xbf16>
    %cst_17 = arith.constant dense<0.000000e+00> : vector<8x32xf32>
    %21 = tpu.matmul %5, %20, %cst_17 {dimension_numbers = #tpu.dot_dimension_numbers<[1], [0], [0], [1], [0, 0, 1, 1], [], []>} : vector<8x32xbf16>, vector<32x32xbf16>, vector<8x32xf32> -> vector<8x32xf32>
    %c0_18 = arith.constant 0 : index
    %c0_19 = arith.constant 0 : index
    %c0_20 = arith.constant 0 : index
    %22 = vector.load %arg8[%c0_18, %c0_19, %c0_20] : memref<1x1x32xf32, #tpu.memory_space<vmem>>, vector<1x1x32xf32>
    %23 = vector.shape_cast %22 : vector<1x1x32xf32> to vector<1x32xf32>
    %24 = vector.broadcast %23 : vector<1x32xf32> to vector<8x32xf32>
    %25 = arith.addf %21, %24 : vector<8x32xf32>
    %c0_21 = arith.constant 0 : index
    %c0_22 = arith.constant 0 : index
    %c0_23 = arith.constant 0 : index
    %26 = vector.load %arg6[%c0_21, %c0_22, %c0_23] : memref<1x32x32xbf16, #tpu.memory_space<vmem>>, vector<1x32x32xbf16>
    %27 = vector.shape_cast %26 : vector<1x32x32xbf16> to vector<32x32xbf16>
    %cst_24 = arith.constant dense<0.000000e+00> : vector<8x32xf32>
    %28 = tpu.matmul %5, %27, %cst_24 {dimension_numbers = #tpu.dot_dimension_numbers<[1], [0], [0], [1], [0, 0, 1, 1], [], []>} : vector<8x32xbf16>, vector<32x32xbf16>, vector<8x32xf32> -> vector<8x32xf32>
    %c0_25 = arith.constant 0 : index
    %c0_26 = arith.constant 0 : index
    %c0_27 = arith.constant 0 : index
    %29 = vector.load %arg9[%c0_25, %c0_26, %c0_27] : memref<1x1x32xf32, #tpu.memory_space<vmem>>, vector<1x1x32xf32>
    %30 = vector.shape_cast %29 : vector<1x1x32xf32> to vector<1x32xf32>
    %31 = vector.broadcast %30 : vector<1x32xf32> to vector<8x32xf32>
    %32 = arith.addf %28, %31 : vector<8x32xf32>
    %33 = arith.truncf %18 : vector<8x32xf32> to vector<8x32xbf16>
    %34 = arith.truncf %25 : vector<8x32xf32> to vector<8x32xbf16>
    %35 = arith.truncf %32 : vector<8x32xf32> to vector<8x32xbf16>
    %36 = vector.extract_strided_slice %33 {offsets = [0, 0], sizes = [8, 8], strides = [1, 1]} : vector<8x32xbf16> to vector<8x8xbf16>
    %37 = vector.extract_strided_slice %34 {offsets = [0, 0], sizes = [8, 8], strides = [1, 1]} : vector<8x32xbf16> to vector<8x8xbf16>
    %cst_28 = arith.constant dense<0.000000e+00> : vector<8x8xf32>
    %38 = tpu.matmul %36, %37, %cst_28 {dimension_numbers = #tpu.dot_dimension_numbers<[1], [1], [0], [0], [0, 0, 1, 0], [], []>} : vector<8x8xbf16>, vector<8x8xbf16>, vector<8x8xf32> -> vector<8x8xf32>
    %39 = vector.broadcast %9 : vector<1x8xf32> to vector<8x8xf32>
    %40 = arith.addf %38, %39 : vector<8x8xf32>
    %cst_29 = arith.constant dense<0xFF800000> : vector<8xf32>
    %41 = vector.multi_reduction <maximumf>, %40, %cst_29 [1] : vector<8x8xf32> to vector<8xf32>
    %42 = vector.shape_cast %41 : vector<8xf32> to vector<8x1xf32>
    %43 = vector.broadcast %42 : vector<8x1xf32> to vector<8x8xf32>
    %44 = arith.subf %40, %43 : vector<8x8xf32>
    %45 = math.exp %44 : vector<8x8xf32>
    %cst_30 = arith.constant dense<0.000000e+00> : vector<8xf32>
    %46 = vector.multi_reduction <add>, %45, %cst_30 [1] : vector<8x8xf32> to vector<8xf32>
    %47 = vector.shape_cast %46 : vector<8xf32> to vector<8x1xf32>
    %48 = tpu.reciprocal %47 {approx = true} : vector<8x1xf32> -> vector<8x1xf32>
    %49 = vector.broadcast %48 : vector<8x1xf32> to vector<8x8xf32>
    %50 = arith.mulf %45, %49 : vector<8x8xf32>
    %51 = arith.truncf %50 : vector<8x8xf32> to vector<8x8xbf16>
    %52 = vector.extract_strided_slice %35 {offsets = [0, 0], sizes = [8, 8], strides = [1, 1]} : vector<8x32xbf16> to vector<8x8xbf16>
    %cst_31 = arith.constant dense<0.000000e+00> : vector<8x8xf32>
    %53 = tpu.matmul %51, %52, %cst_31 {dimension_numbers = #tpu.dot_dimension_numbers<[1], [0], [0], [1], [0, 0, 1, 1], [], []>} : vector<8x8xbf16>, vector<8x8xbf16>, vector<8x8xf32> -> vector<8x8xf32>
    %54 = vector.extract_strided_slice %33 {offsets = [0, 8], sizes = [8, 8], strides = [1, 1]} : vector<8x32xbf16> to vector<8x8xbf16>
    %55 = vector.extract_strided_slice %34 {offsets = [0, 8], sizes = [8, 8], strides = [1, 1]} : vector<8x32xbf16> to vector<8x8xbf16>
    %cst_32 = arith.constant dense<0.000000e+00> : vector<8x8xf32>
    %56 = tpu.matmul %54, %55, %cst_32 {dimension_numbers = #tpu.dot_dimension_numbers<[1], [1], [0], [0], [0, 0, 1, 0], [], []>} : vector<8x8xbf16>, vector<8x8xbf16>, vector<8x8xf32> -> vector<8x8xf32>
    %57 = vector.broadcast %9 : vector<1x8xf32> to vector<8x8xf32>
    %58 = arith.addf %56, %57 : vector<8x8xf32>
    %cst_33 = arith.constant dense<0xFF800000> : vector<8xf32>
    %59 = vector.multi_reduction <maximumf>, %58, %cst_33 [1] : vector<8x8xf32> to vector<8xf32>
    %60 = vector.shape_cast %59 : vector<8xf32> to vector<8x1xf32>
    %61 = vector.broadcast %60 : vector<8x1xf32> to vector<8x8xf32>
    %62 = arith.subf %58, %61 : vector<8x8xf32>
    %63 = math.exp %62 : vector<8x8xf32>
    %cst_34 = arith.constant dense<0.000000e+00> : vector<8xf32>
    %64 = vector.multi_reduction <add>, %63, %cst_34 [1] : vector<8x8xf32> to vector<8xf32>
    %65 = vector.shape_cast %64 : vector<8xf32> to vector<8x1xf32>
    %66 = tpu.reciprocal %65 {approx = true} : vector<8x1xf32> -> vector<8x1xf32>
    %67 = vector.broadcast %66 : vector<8x1xf32> to vector<8x8xf32>
    %68 = arith.mulf %63, %67 : vector<8x8xf32>
    %69 = arith.truncf %68 : vector<8x8xf32> to vector<8x8xbf16>
    %70 = vector.extract_strided_slice %35 {offsets = [0, 8], sizes = [8, 8], strides = [1, 1]} : vector<8x32xbf16> to vector<8x8xbf16>
    %cst_35 = arith.constant dense<0.000000e+00> : vector<8x8xf32>
    %71 = tpu.matmul %69, %70, %cst_35 {dimension_numbers = #tpu.dot_dimension_numbers<[1], [0], [0], [1], [0, 0, 1, 1], [], []>} : vector<8x8xbf16>, vector<8x8xbf16>, vector<8x8xf32> -> vector<8x8xf32>
    %72 = vector.extract_strided_slice %33 {offsets = [0, 16], sizes = [8, 8], strides = [1, 1]} : vector<8x32xbf16> to vector<8x8xbf16>
    %73 = vector.extract_strided_slice %34 {offsets = [0, 16], sizes = [8, 8], strides = [1, 1]} : vector<8x32xbf16> to vector<8x8xbf16>
    %cst_36 = arith.constant dense<0.000000e+00> : vector<8x8xf32>
    %74 = tpu.matmul %72, %73, %cst_36 {dimension_numbers = #tpu.dot_dimension_numbers<[1], [1], [0], [0], [0, 0, 1, 0], [], []>} : vector<8x8xbf16>, vector<8x8xbf16>, vector<8x8xf32> -> vector<8x8xf32>
    %75 = vector.broadcast %9 : vector<1x8xf32> to vector<8x8xf32>
    %76 = arith.addf %74, %75 : vector<8x8xf32>
    %cst_37 = arith.constant dense<0xFF800000> : vector<8xf32>
    %77 = vector.multi_reduction <maximumf>, %76, %cst_37 [1] : vector<8x8xf32> to vector<8xf32>
    %78 = vector.shape_cast %77 : vector<8xf32> to vector<8x1xf32>
    %79 = vector.broadcast %78 : vector<8x1xf32> to vector<8x8xf32>
    %80 = arith.subf %76, %79 : vector<8x8xf32>
    %81 = math.exp %80 : vector<8x8xf32>
    %cst_38 = arith.constant dense<0.000000e+00> : vector<8xf32>
    %82 = vector.multi_reduction <add>, %81, %cst_38 [1] : vector<8x8xf32> to vector<8xf32>
    %83 = vector.shape_cast %82 : vector<8xf32> to vector<8x1xf32>
    %84 = tpu.reciprocal %83 {approx = true} : vector<8x1xf32> -> vector<8x1xf32>
    %85 = vector.broadcast %84 : vector<8x1xf32> to vector<8x8xf32>
    %86 = arith.mulf %81, %85 : vector<8x8xf32>
    %87 = arith.truncf %86 : vector<8x8xf32> to vector<8x8xbf16>
    %88 = vector.extract_strided_slice %35 {offsets = [0, 16], sizes = [8, 8], strides = [1, 1]} : vector<8x32xbf16> to vector<8x8xbf16>
    %cst_39 = arith.constant dense<0.000000e+00> : vector<8x8xf32>
    %89 = tpu.matmul %87, %88, %cst_39 {dimension_numbers = #tpu.dot_dimension_numbers<[1], [0], [0], [1], [0, 0, 1, 1], [], []>} : vector<8x8xbf16>, vector<8x8xbf16>, vector<8x8xf32> -> vector<8x8xf32>
    %90 = vector.extract_strided_slice %33 {offsets = [0, 24], sizes = [8, 8], strides = [1, 1]} : vector<8x32xbf16> to vector<8x8xbf16>
    %91 = vector.extract_strided_slice %34 {offsets = [0, 24], sizes = [8, 8], strides = [1, 1]} : vector<8x32xbf16> to vector<8x8xbf16>
    %cst_40 = arith.constant dense<0.000000e+00> : vector<8x8xf32>
    %92 = tpu.matmul %90, %91, %cst_40 {dimension_numbers = #tpu.dot_dimension_numbers<[1], [1], [0], [0], [0, 0, 1, 0], [], []>} : vector<8x8xbf16>, vector<8x8xbf16>, vector<8x8xf32> -> vector<8x8xf32>
    %93 = vector.broadcast %9 : vector<1x8xf32> to vector<8x8xf32>
    %94 = arith.addf %92, %93 : vector<8x8xf32>
    %cst_41 = arith.constant dense<0xFF800000> : vector<8xf32>
    %95 = vector.multi_reduction <maximumf>, %94, %cst_41 [1] : vector<8x8xf32> to vector<8xf32>
    %96 = vector.shape_cast %95 : vector<8xf32> to vector<8x1xf32>
    %97 = vector.broadcast %96 : vector<8x1xf32> to vector<8x8xf32>
    %98 = arith.subf %94, %97 : vector<8x8xf32>
    %99 = math.exp %98 : vector<8x8xf32>
    %cst_42 = arith.constant dense<0.000000e+00> : vector<8xf32>
    %100 = vector.multi_reduction <add>, %99, %cst_42 [1] : vector<8x8xf32> to vector<8xf32>
    %101 = vector.shape_cast %100 : vector<8xf32> to vector<8x1xf32>
    %102 = tpu.reciprocal %101 {approx = true} : vector<8x1xf32> -> vector<8x1xf32>
    %103 = vector.broadcast %102 : vector<8x1xf32> to vector<8x8xf32>
    %104 = arith.mulf %99, %103 : vector<8x8xf32>
    %105 = arith.truncf %104 : vector<8x8xf32> to vector<8x8xbf16>
    %106 = vector.extract_strided_slice %35 {offsets = [0, 24], sizes = [8, 8], strides = [1, 1]} : vector<8x32xbf16> to vector<8x8xbf16>
    %cst_43 = arith.constant dense<0.000000e+00> : vector<8x8xf32>
    %107 = tpu.matmul %105, %106, %cst_43 {dimension_numbers = #tpu.dot_dimension_numbers<[1], [0], [0], [1], [0, 0, 1, 1], [], []>} : vector<8x8xbf16>, vector<8x8xbf16>, vector<8x8xf32> -> vector<8x8xf32>
    %108 = tpu.concatenate %53, %71, %89, %107 in 1 : vector<8x8xf32>, vector<8x8xf32>, vector<8x8xf32>, vector<8x8xf32> -> vector<8x32xf32>
    %109 = arith.truncf %108 : vector<8x32xf32> to vector<8x32xbf16>
    %c0_44 = arith.constant 0 : index
    %c0_45 = arith.constant 0 : index
    %c0_46 = arith.constant 0 : index
    %110 = vector.load %arg10[%c0_44, %c0_45, %c0_46] : memref<1x32x32xbf16, #tpu.memory_space<vmem>>, vector<1x32x32xbf16>
    %111 = vector.shape_cast %110 : vector<1x32x32xbf16> to vector<32x32xbf16>
    %cst_47 = arith.constant dense<0.000000e+00> : vector<8x32xf32>
    %112 = tpu.matmul %109, %111, %cst_47 {dimension_numbers = #tpu.dot_dimension_numbers<[1], [0], [0], [1], [0, 0, 1, 1], [], []>} : vector<8x32xbf16>, vector<32x32xbf16>, vector<8x32xf32> -> vector<8x32xf32>
    %c0_48 = arith.constant 0 : index
    %c0_49 = arith.constant 0 : index
    %c0_50 = arith.constant 0 : index
    %113 = vector.load %arg11[%c0_48, %c0_49, %c0_50] : memref<1x1x32xf32, #tpu.memory_space<vmem>>, vector<1x1x32xf32>
    %114 = vector.shape_cast %113 : vector<1x1x32xf32> to vector<1x32xf32>
    %115 = vector.broadcast %114 : vector<1x32xf32> to vector<8x32xf32>
    %116 = arith.addf %112, %115 : vector<8x32xf32>
    %117 = arith.addf %4, %116 : vector<8x32xf32>
    %c0_51 = arith.constant 0 : index
    %c0_52 = arith.constant 0 : index
    %c0_53 = arith.constant 0 : index
    %118 = vector.load %arg12[%c0_51, %c0_52, %c0_53] : memref<1x1x32xf32, #tpu.memory_space<vmem>>, vector<1x1x32xf32>
    %119 = vector.shape_cast %118 : vector<1x1x32xf32> to vector<1x32xf32>
    %c0_54 = arith.constant 0 : index
    %c0_55 = arith.constant 0 : index
    %c0_56 = arith.constant 0 : index
    %120 = vector.load %arg13[%c0_54, %c0_55, %c0_56] : memref<1x1x32xf32, #tpu.memory_space<vmem>>, vector<1x1x32xf32>
    %121 = vector.shape_cast %120 : vector<1x1x32xf32> to vector<1x32xf32>
    %cst_57 = arith.constant dense<0.000000e+00> : vector<8xf32>
    %122 = vector.multi_reduction <add>, %117, %cst_57 [1] : vector<8x32xf32> to vector<8xf32>
    %123 = vector.shape_cast %122 : vector<8xf32> to vector<8x1xf32>
    %cst_58 = arith.constant 3.200000e+01 : f32
    %124 = vector.broadcast %cst_58 : f32 to vector<8x1xf32>
    %125 = arith.divf %123, %124 : vector<8x1xf32>
    %126 = vector.broadcast %125 : vector<8x1xf32> to vector<8x32xf32>
    %127 = arith.subf %117, %126 : vector<8x32xf32>
    %128 = arith.mulf %127, %127 : vector<8x32xf32>
    %cst_59 = arith.constant dense<0.000000e+00> : vector<8xf32>
    %129 = vector.multi_reduction <add>, %128, %cst_59 [1] : vector<8x32xf32> to vector<8xf32>
    %130 = vector.shape_cast %129 : vector<8xf32> to vector<8x1xf32>
    %cst_60 = arith.constant 3.200000e+01 : f32
    %131 = vector.broadcast %cst_60 : f32 to vector<8x1xf32>
    %132 = arith.divf %130, %131 : vector<8x1xf32>
    %cst_61 = arith.constant 9.99999974E-6 : f32
    %133 = vector.broadcast %cst_61 : f32 to vector<8x1xf32>
    %134 = arith.addf %132, %133 : vector<8x1xf32>
    %135 = math.rsqrt %134 : vector<8x1xf32>
    %136 = vector.broadcast %135 : vector<8x1xf32> to vector<8x32xf32>
    %137 = arith.mulf %127, %136 : vector<8x32xf32>
    %138 = vector.broadcast %119 : vector<1x32xf32> to vector<8x32xf32>
    %139 = arith.mulf %137, %138 : vector<8x32xf32>
    %140 = vector.broadcast %121 : vector<1x32xf32> to vector<8x32xf32>
    %141 = arith.addf %139, %140 : vector<8x32xf32>
    %142 = arith.truncf %141 : vector<8x32xf32> to vector<8x32xbf16>
    %c0_62 = arith.constant 0 : index
    %c0_63 = arith.constant 0 : index
    %c0_64 = arith.constant 0 : index
    %143 = vector.load %arg14[%c0_62, %c0_63, %c0_64] : memref<1x32x64xbf16, #tpu.memory_space<vmem>>, vector<1x32x64xbf16>
    %144 = vector.shape_cast %143 : vector<1x32x64xbf16> to vector<32x64xbf16>
    %cst_65 = arith.constant dense<0.000000e+00> : vector<8x64xf32>
    %145 = tpu.matmul %142, %144, %cst_65 {dimension_numbers = #tpu.dot_dimension_numbers<[1], [0], [0], [1], [0, 0, 1, 1], [], []>} : vector<8x32xbf16>, vector<32x64xbf16>, vector<8x64xf32> -> vector<8x64xf32>
    %c0_66 = arith.constant 0 : index
    %c0_67 = arith.constant 0 : index
    %c0_68 = arith.constant 0 : index
    %146 = vector.load %arg15[%c0_66, %c0_67, %c0_68] : memref<1x1x64xf32, #tpu.memory_space<vmem>>, vector<1x1x64xf32>
    %147 = vector.shape_cast %146 : vector<1x1x64xf32> to vector<1x64xf32>
    %148 = vector.broadcast %147 : vector<1x64xf32> to vector<8x64xf32>
    %149 = arith.addf %145, %148 : vector<8x64xf32>
    %cst_69 = arith.constant 5.000000e-01 : f32
    %150 = vector.broadcast %cst_69 : f32 to vector<8x64xf32>
    %151 = arith.mulf %150, %149 : vector<8x64xf32>
    %cst_70 = arith.constant 0.707106769 : f32
    %152 = vector.broadcast %cst_70 : f32 to vector<8x64xf32>
    %153 = arith.mulf %149, %152 : vector<8x64xf32>
    %154 = math.erf %153 : vector<8x64xf32>
    %cst_71 = arith.constant 1.000000e+00 : f32
    %155 = vector.broadcast %cst_71 : f32 to vector<8x64xf32>
    %156 = arith.addf %155, %154 : vector<8x64xf32>
    %157 = arith.mulf %151, %156 : vector<8x64xf32>
    %158 = arith.truncf %157 : vector<8x64xf32> to vector<8x64xbf16>
    %c0_72 = arith.constant 0 : index
    %c0_73 = arith.constant 0 : index
    %c0_74 = arith.constant 0 : index
    %159 = vector.load %arg16[%c0_72, %c0_73, %c0_74] : memref<1x64x32xbf16, #tpu.memory_space<vmem>>, vector<1x64x32xbf16>
    %160 = vector.shape_cast %159 : vector<1x64x32xbf16> to vector<64x32xbf16>
    %cst_75 = arith.constant dense<0.000000e+00> : vector<8x32xf32>
    %161 = tpu.matmul %158, %160, %cst_75 {dimension_numbers = #tpu.dot_dimension_numbers<[1], [0], [0], [1], [0, 0, 1, 1], [], []>} : vector<8x64xbf16>, vector<64x32xbf16>, vector<8x32xf32> -> vector<8x32xf32>
    %c0_76 = arith.constant 0 : index
    %c0_77 = arith.constant 0 : index
    %c0_78 = arith.constant 0 : index
    %162 = vector.load %arg17[%c0_76, %c0_77, %c0_78] : memref<1x1x32xf32, #tpu.memory_space<vmem>>, vector<1x1x32xf32>
    %163 = vector.shape_cast %162 : vector<1x1x32xf32> to vector<1x32xf32>
    %164 = vector.broadcast %163 : vector<1x32xf32> to vector<8x32xf32>
    %165 = arith.addf %161, %164 : vector<8x32xf32>
    %166 = arith.addf %141, %165 : vector<8x32xf32>
    %c0_79 = arith.constant 0 : index
    %c0_80 = arith.constant 0 : index
    %c0_81 = arith.constant 0 : index
    %167 = vector.load %arg18[%c0_79, %c0_80, %c0_81] : memref<1x1x32xf32, #tpu.memory_space<vmem>>, vector<1x1x32xf32>
    %168 = vector.shape_cast %167 : vector<1x1x32xf32> to vector<1x32xf32>
    %c0_82 = arith.constant 0 : index
    %c0_83 = arith.constant 0 : index
    %c0_84 = arith.constant 0 : index
    %169 = vector.load %arg19[%c0_82, %c0_83, %c0_84] : memref<1x1x32xf32, #tpu.memory_space<vmem>>, vector<1x1x32xf32>
    %170 = vector.shape_cast %169 : vector<1x1x32xf32> to vector<1x32xf32>
    %cst_85 = arith.constant dense<0.000000e+00> : vector<8xf32>
    %171 = vector.multi_reduction <add>, %166, %cst_85 [1] : vector<8x32xf32> to vector<8xf32>
    %172 = vector.shape_cast %171 : vector<8xf32> to vector<8x1xf32>
    %cst_86 = arith.constant 3.200000e+01 : f32
    %173 = vector.broadcast %cst_86 : f32 to vector<8x1xf32>
    %174 = arith.divf %172, %173 : vector<8x1xf32>
    %175 = vector.broadcast %174 : vector<8x1xf32> to vector<8x32xf32>
    %176 = arith.subf %166, %175 : vector<8x32xf32>
    %177 = arith.mulf %176, %176 : vector<8x32xf32>
    %cst_87 = arith.constant dense<0.000000e+00> : vector<8xf32>
    %178 = vector.multi_reduction <add>, %177, %cst_87 [1] : vector<8x32xf32> to vector<8xf32>
    %179 = vector.shape_cast %178 : vector<8xf32> to vector<8x1xf32>
    %cst_88 = arith.constant 3.200000e+01 : f32
    %180 = vector.broadcast %cst_88 : f32 to vector<8x1xf32>
    %181 = arith.divf %179, %180 : vector<8x1xf32>
    %cst_89 = arith.constant 9.99999974E-6 : f32
    %182 = vector.broadcast %cst_89 : f32 to vector<8x1xf32>
    %183 = arith.addf %181, %182 : vector<8x1xf32>
    %184 = math.rsqrt %183 : vector<8x1xf32>
    %185 = vector.broadcast %184 : vector<8x1xf32> to vector<8x32xf32>
    %186 = arith.mulf %176, %185 : vector<8x32xf32>
    %187 = vector.broadcast %168 : vector<1x32xf32> to vector<8x32xf32>
    %188 = arith.mulf %186, %187 : vector<8x32xf32>
    %189 = vector.broadcast %170 : vector<1x32xf32> to vector<8x32xf32>
    %190 = arith.addf %188, %189 : vector<8x32xf32>
    %c0_90 = arith.constant 0 : index
    %c0_91 = arith.constant 0 : index
    %c0_92 = arith.constant 0 : index
    %191 = vector.load %arg20[%c0_90, %c0_91, %c0_92] : memref<1x8x32xf32, #tpu.memory_space<vmem>>, vector<1x8x32xf32>
    %192 = vector.shape_cast %191 : vector<1x8x32xf32> to vector<8x32xf32>
    %193 = vector.shape_cast %190 : vector<8x32xf32> to vector<1x8x32xf32>
    tpu.vector_store %arg20[%c0_90, %c0_91, %c0_92], %193 {strides = array<i32>} : memref<1x8x32xf32, #tpu.memory_space<vmem>>, vector<1x8x32xf32>,
    return
  }
  func.func @transform_0(%arg0: i32, %arg1: i32) -> (i32, i32, i32) {
    %c0_i32 = arith.constant 0 : i32
    %c0_i32_0 = arith.constant 0 : i32
    %c0_i32_1 = arith.constant 0 : i32
    return %arg0, %c0_i32, %c0_i32_0 : i32, i32, i32
  }
  func.func @transform_1(%arg0: i32, %arg1: i32) -> (i32, i32, i32) {
    %c0_i32 = arith.constant 0 : i32
    %c0_i32_0 = arith.constant 0 : i32
    %c0_i32_1 = arith.constant 0 : i32
    return %arg0, %c0_i32, %c0_i32_0 : i32, i32, i32
  }
  func.func @transform_2(%arg0: i32, %arg1: i32) -> (i32, i32, i32) {
    %c0_i32 = arith.constant 0 : i32
    %c0_i32_0 = arith.constant 0 : i32
    %c0_i32_1 = arith.constant 0 : i32
    return %arg1, %c0_i32, %c0_i32_0 : i32, i32, i32
  }
  func.func @transform_3(%arg0: i32, %arg1: i32) -> (i32, i32, i32) {
    %c0_i32 = arith.constant 0 : i32
    %c0_i32_0 = arith.constant 0 : i32
    %c0_i32_1 = arith.constant 0 : i32
    return %arg1, %c0_i32, %c0_i32_0 : i32, i32, i32
  }
  func.func @transform_4(%arg0: i32, %arg1: i32) -> (i32, i32, i32) {
    %c0_i32 = arith.constant 0 : i32
    %c0_i32_0 = arith.constant 0 : i32
    %c0_i32_1 = arith.constant 0 : i32
    return %arg1, %c0_i32, %c0_i32_0 : i32, i32, i32
  }
  func.func @transform_5(%arg0: i32, %arg1: i32) -> (i32, i32, i32) {
    %c0_i32 = arith.constant 0 : i32
    %c0_i32_0 = arith.constant 0 : i32
    %c0_i32_1 = arith.constant 0 : i32
    return %arg1, %c0_i32, %c0_i32_0 : i32, i32, i32
  }
  func.func @transform_6(%arg0: i32, %arg1: i32) -> (i32, i32, i32) {
    %c0_i32 = arith.constant 0 : i32
    %c0_i32_0 = arith.constant 0 : i32
    %c0_i32_1 = arith.constant 0 : i32
    return %arg1, %c0_i32, %c0_i32_0 : i32, i32, i32
  }
  func.func @transform_7(%arg0: i32, %arg1: i32) -> (i32, i32, i32) {
    %c0_i32 = arith.constant 0 : i32
    %c0_i32_0 = arith.constant 0 : i32
    %c0_i32_1 = arith.constant 0 : i32
    return %arg1, %c0_i32, %c0_i32_0 : i32, i32, i32
  }
  func.func @transform_8(%arg0: i32, %arg1: i32) -> (i32, i32, i32) {
    %c0_i32 = arith.constant 0 : i32
    %c0_i32_0 = arith.constant 0 : i32
    %c0_i32_1 = arith.constant 0 : i32
    return %arg1, %c0_i32, %c0_i32_0 : i32, i32, i32
  }
  func.func @transform_9(%arg0: i32, %arg1: i32) -> (i32, i32, i32) {
    %c0_i32 = arith.constant 0 : i32
    %c0_i32_0 = arith.constant 0 : i32
    %c0_i32_1 = arith.constant 0 : i32
    return %arg1, %c0_i32, %c0_i32_0 : i32, i32, i32
  }
  func.func @transform_10(%arg0: i32, %arg1: i32) -> (i32, i32, i32) {
    %c0_i32 = arith.constant 0 : i32
    %c0_i32_0 = arith.constant 0 : i32
    %c0_i32_1 = arith.constant 0 : i32
    return %arg1, %c0_i32, %c0_i32_0 : i32, i32, i32
  }
  func.func @transform_11(%arg0: i32, %arg1: i32) -> (i32, i32, i32) {
    %c0_i32 = arith.constant 0 : i32
    %c0_i32_0 = arith.constant 0 : i32
    %c0_i32_1 = arith.constant 0 : i32
    return %arg1, %c0_i32, %c0_i32_0 : i32, i32, i32
  }
  func.func @transform_12(%arg0: i32, %arg1: i32) -> (i32, i32, i32) {
    %c0_i32 = arith.constant 0 : i32
    %c0_i32_0 = arith.constant 0 : i32
    %c0_i32_1 = arith.constant 0 : i32
    return %arg1, %c0_i32, %c0_i32_0 : i32, i32, i32
  }
  func.func @transform_13(%arg0: i32, %arg1: i32) -> (i32, i32, i32) {
    %c0_i32 = arith.constant 0 : i32
    %c0_i32_0 = arith.constant 0 : i32
    %c0_i32_1 = arith.constant 0 : i32
    return %arg1, %c0_i32, %c0_i32_0 : i32, i32, i32
  }
  func.func @transform_14(%arg0: i32, %arg1: i32) -> (i32, i32, i32) {
    %c0_i32 = arith.constant 0 : i32
    %c0_i32_0 = arith.constant 0 : i32
    %c0_i32_1 = arith.constant 0 : i32
    return %arg1, %c0_i32, %c0_i32_0 : i32, i32, i32
  }
  func.func @transform_15(%arg0: i32, %arg1: i32) -> (i32, i32, i32) {
    %c0_i32 = arith.constant 0 : i32
    %c0_i32_0 = arith.constant 0 : i32
    %c0_i32_1 = arith.constant 0 : i32
    return %arg1, %c0_i32, %c0_i32_0 : i32, i32, i32
  }
  func.func @transform_16(%arg0: i32, %arg1: i32) -> (i32, i32, i32) {
    %c0_i32 = arith.constant 0 : i32
    %c0_i32_0 = arith.constant 0 : i32
    %c0_i32_1 = arith.constant 0 : i32
    return %arg1, %c0_i32, %c0_i32_0 : i32, i32, i32
  }
  func.func @transform_17(%arg0: i32, %arg1: i32) -> (i32, i32, i32) {
    %c0_i32 = arith.constant 0 : i32
    %c0_i32_0 = arith.constant 0 : i32
    %c0_i32_1 = arith.constant 0 : i32
    return %arg1, %c0_i32, %c0_i32_0 : i32, i32, i32
  }
  func.func @transform_18(%arg0: i32, %arg1: i32) -> (i32, i32, i32) {
    %c0_i32 = arith.constant 0 : i32
    %c0_i32_0 = arith.constant 0 : i32
    %c0_i32_1 = arith.constant 0 : i32
    return %arg0, %c0_i32, %c0_i32_0 : i32, i32, i32
  }
}

</mosaic_0001>

<bundles_post_ra>
// kernel: _lambda_.2
= control target key start
LH: loop header
LB: loop body
LE: loop exit
PB: predicated region body
PF: predicated region fallthrough
CT: control target
= control target key end

     0   :  { %s452_s18 = smov 0   ;;  %s490_s0 = inlined_call_operand.vmem [shape: f32[2,8,32], index: 0, kind: input, shape index: {}]   ;;  %s491_s1 = inlined_call_operand.vmem [shape: f32[2,8,32], index: 1, kind: input, shape index: {}]   ;;  %s492_s2 = inlined_call_operand.vmem [shape: f32[2,8,1], index: 2, kind: input, shape index: {}]   ;;  %s493_s3 = inlined_call_operand.vmem [shape: f32[1,32], index: 3, kind: input, shape index: {}]   ;;  %s494_s4 = inlined_call_operand.vmem [shape: f32[1,32], index: 4, kind: input, shape index: {}]   ;;  %s495_s5 = inlined_call_operand.vmem [shape: f32[2,8,32], index: 5, kind: output, shape index: {}]  }
   0x1 LB: > { %s383_s19 = sadd.s32 4294967295, %s418_s18   ;;  %p387_p0 = scmp.ge.s32.totalorder %s418_s18, 1  ;;  %s418_s18 = sphi %s452_s18, %s15_s18  }
   0x2   : > { %p204_p1 = scmp.lt.s32.totalorder %s418_s18, 3 }
   0x4   : > { %p205_p2 = pnand %p387_p0, %p204_p1 }
   0x5   : > { %p238_p3 = scmp.lt.s32.totalorder (!%p205_p2), %s383_s19, 1 }
   0x6   : > { %208 = sbr.rel (%p205_p2) target bundleno = 289 (0x121), region = 40 }
   0xb   : > { %s497_s19 = smov (!%p238_p3, %s383_s19), 1  ;;  %vm259_vm0 = vcmask 261120   ;;  %v420_v4 = vmov 32.0   ;;  %v421_v6 = vmov 0   ;;  %v406_v28 = vld [vmem:[%s493_s3] ss:$0 sm:$0xff] }
   0xc   : > { %s460_s20 = sshll.u32 %s497_s19, 3  ;;  %408 = vrcp.f32 %v420_v4  ;;  %404 = vset.pattern.permute.xlu1 %v421_v6  ;;  %405 = vset.pattern.permute.xlu0 %v421_v6  ;;  %v407_v30 = vld [vmem:[%s494_s4] ss:$0 sm:$0xff] }
   0xd   : > { %s241_s23 = scalar_lea.vmem %s490_s0, %s460_s20  ;;  %s245_s26 = scalar_lea.vmem %s491_s1, %s460_s20 }
   0xe   : > { %v254_v0 = vld [vmem:[%s241_s23] sm:$0xff]  ;;  %s249_s29 = scalar_lea.vmem %s492_s2, %s460_s20  ;;  %s253_s11 = scalar_lea.vmem %s495_s5, %s460_s20 }
   0xf   : > { %v255_v1 = vld [vmem:[%s245_s26] sm:$0xff] }
  0x10   : > { %v256_v2 = vadd.f32 %v255_v1, %v254_v0  ;;  %v297_v5 = vld [vmem:[%s249_s29] sm:$0xff] }
  0x11   : > { %v298_v7 = vsub.f32 1.0, %v297_v5 }
  0x12   : > { %v260_v3 = vsel %vm259_vm0, %v256_v2, 0.0  ;;  %v409_v8 = vpop.eup %408 }
  0x13   : > { %261 = vadd.xlane.f32.xlu0 %v260_v3  ;;  %301 = vperm.xlu1 %404, %v298_v7   ;;  %v264_v9 = vmul.f32 32.0, %v409_v8  ;;  %vm268_vm1 = vweird.f32 %v409_v8 }
  0x15   : > { %v265_v10 = vsub.f32 1.0, %v264_v9 }
  0x17   : > { %v266_v11 = vmul.f32 %v409_v8, %v265_v10 }
  0x19   : > { %v267_v12 = vadd.f32 %v409_v8, %v266_v11 }
  0x1b   : > { %v269_v13 = vsel %vm268_vm1, %v409_v8, %v267_v12 }
  0x85   : > { %v302_v33 = vpop.permute.xlu1 %301 }
  0x86   : > { %v262_v14 = vpop.xlane.xlu0 %261 }
  0x87   : > { %v270_v15 = vmul.f32 %v269_v13, %v262_v14 }
  0x89   : > { %v271_v16 = vsub.f32 %v256_v2, %v270_v15 }
  0x8b   : > { %v272_v17 = vmul.f32 %v271_v16, %v271_v16 }
  0x8d   : > { %v273_v18 = vsel %vm259_vm0, %v272_v17, 0.0 }
  0x8e   : > { %274 = vadd.xlane.f32.xlu0 %v273_v18 }
 0x101   : > { %v275_v19 = vpop.xlane.xlu0 %274 }
 0x102   : > { %v276_v20 = vmul.f32 %v275_v19, %v269_v13 }
 0x104   : > { %v277_v21 = vadd.f32 1e-05, %v276_v20 }
 0x106   : > { %410 = vrsqrt.f32 %v277_v21  ;;  %vm284_vm3 = vweird.f32 %v277_v21 }
 0x10c   : > { %v411_v22 = vpop.eup %410 }
 0x10d   : > { %v279_v23 = vmul.f32 %v411_v22, %v277_v21  ;;  %vm285_vm2 = vweird.f32 %v411_v22 }
 0x10e   : > { %vm286_vm4 = vmor %vm284_vm3, %vm285_vm2 }
 0x10f   : > { %v280_v24 = vmul.f32 %v411_v22, %v279_v23 }
 0x111   : > { %v281_v25 = vmul.f32 0.5, %v280_v24 }
 0x113   : > { %v282_v26 = vsub.f32 1.5, %v281_v25 }
 0x115   : > { %v283_v27 = vmul.f32 %v411_v22, %v282_v26 }
 0x117   : > { %v287_v29 = vsel %vm286_vm4, %v411_v22, %v283_v27 }
 0x118   : > { %v288_v31 = vmul.f32 %v287_v29, %v271_v16 }
 0x11a   : > { %v292_v32 = vmul.f32 %v406_v28, %v288_v31 }
 0x11c   : > { %v296_v34 = vadd.f32 %v407_v30, %v292_v32 }
 0x11e   : > { %v304_v35 = vmul.f32 %v302_v33, %v296_v34 }
 0x120   : > { %305 = vst.msk [vmem:[%s253_s11] sm:$0xff] %vm259_vm0, %v304_v35 }
 0x121 PF: > { %s15_s18 = sadd.s32 1, %s418_s18  }
 0x122   : > { %p12_p4 = scmp.ge.s32.totalorder %s15_s18, 4  }
 0x124   :  { %14 = sbr.rel (!%p12_p4) target bundleno = 1 (0x1), region = 76 }

// kernel: _lambda_.3
= control target key start
LH: loop header
LB: loop body
LE: loop exit
PB: predicated region body
PF: predicated region fallthrough
CT: control target
= control target key end

     0   :  { %s2485_s0 = inlined_call_operand.vmem [shape: f32[2,8,32], index: 0, kind: input, shape index: {}]   ;;  %s2486_s1 = inlined_call_operand.vmem [shape: f32[2,1,8], index: 1, kind: input, shape index: {}]   ;;  %s2487_s2 = inlined_call_operand.vmem [shape: bf16[2,32,32], index: 2, kind: input, shape index: {}]   ;;  %s2488_s3 = inlined_call_operand.vmem [shape: bf16[2,32,32], index: 3, kind: input, shape index: {}]   ;;  %s2489_s4 = inlined_call_operand.vmem [shape: bf16[2,32,32], index: 4, kind: input, shape index: {}]   ;;  %s2490_s5 = inlined_call_operand.vmem [shape: f32[2,1,32], index: 5, kind: input, shape index: {}]   ;;  %s2491_s6 = inlined_call_operand.vmem [shape: f32[2,1,32], index: 6, kind: input, shape index: {}]   ;;  %s2492_s7 = inlined_call_operand.vmem [shape: f32[2,1,32], index: 7, kind: input, shape index: {}]   ;;  %s2493_s8 = inlined_call_operand.vmem [shape: bf16[2,32,32], index: 8, kind: input, shape index: {}]   ;;  %s2494_s9 = inlined_call_operand.vmem [shape: f32[2,1,32], index: 9, kind: input, shape index: {}]   ;;  %s2495_s10 = inlined_call_operand.vmem [shape: f32[2,1,32], index: 10, kind: input, shape index: {}]   ;;  %s2496_s11 = inlined_call_operand.vmem [shape: f32[2,1,32], index: 11, kind: input, shape index: {}]   ;;  %s2497_s12 = inlined_call_operand.vmem [shape: bf16[2,32,64], index: 12, kind: input, shape index: {}]   ;;  %s2498_s13 = inlined_call_operand.vmem [shape: f32[2,1,64], index: 13, kind: input, shape index: {}]   ;;  %s2499_s14 = inlined_call_operand.vmem [shape: bf16[2,64,32], index: 14, kind: input, shape index: {}]   ;;  %s2500_s15 = inlined_call_operand.vmem [shape: f32[2,1,32], index: 15, kind: input, shape index: {}]   ;;  %s2501_s16 = inlined_call_operand.vmem [shape: f32[2,1,32], index: 16, kind: input, shape index: {}]   ;;  %s2502_s17 = inlined_call_operand.vmem [shape: f32[2,1,32], index: 17, kind: input, shape index: {}]   ;;  %s2503_s18 = inlined_call_operand.hbm [shape: f32[2,8,32], index: 18, kind: output, shape index: {}]  }
   0x1   :  { %2521 = sst [smem:[#allocation20_spill]] %s2485_s0 }
   0x2   :  { %2522 = sst [smem:[#allocation21_spill]] %s2486_s1 }
   0x3   :  { %2523 = sst [smem:[#allocation22_spill]] %s2487_s2 }
   0x4   :  { %2524 = sst [smem:[#allocation23_spill]] %s2488_s3 }
   0x5   :  { %2525 = sst [smem:[#allocation24_spill]] %s2489_s4 }
   0x6   :  { %2526 = sst [smem:[#allocation25_spill]] %s2493_s8 }
   0x7   :  { %2527 = sst [smem:[#allocation26_spill]] %s2494_s9 }
   0x8   :  { %2528 = sst [smem:[#allocation27_spill]] %s2495_s10 }
   0x9   :  { %2529 = sst [smem:[#allocation28_spill]] %s2496_s11 }
   0xa   :  { %2530 = sst [smem:[#allocation29_spill]] %s2497_s12 }
   0xb   :  { %2531 = sst [smem:[#allocation30_spill]] %s2498_s13 }
   0xc   :  { %2532 = sst [smem:[#allocation31_spill]] %s2499_s14 }
   0xd   :  { %2533 = sst [smem:[#allocation32_spill]] %s2500_s15 }
   0xe   :  { %2534 = sst [smem:[#allocation33_spill]] %s2501_s16 }
   0xf   :  { %2535 = sst [smem:[#allocation34_spill]] %s2502_s17 }
  0x10   :  { %2536 = sst [smem:[#allocation35_spill]] %s2503_s18 }
  0x11   :  { %23 = vsyncpa [#allocation3], 0 }
  0x12   :  { %25 = vsyncpa [#allocation3 + $0x1], 0  ;;  %s2153_s27 = smov 0   ;;  %s2155_s28 = smov 0  }
  0x13   :  { %s2157_s29 = smov 0   ;;  %s2159_s30 = smov 0  }
  0x14   :  { %s2161_s0 = smov 0   ;;  %s2163_s19 = smov 0  }
  0x15   :  { %s2165_s1 = smov 0   ;;  %s2167_s20 = smov 0  }
  0x16 LB: > { %2537 = sst [smem:[#allocation5_spill]] %s2021_s27  ;;  %s1728_s21 = sadd.s32 4294967295, %s2049_s20   ;;  %s2049_s20 = sphi %s2167_s20, %s31_s20   ;;  %s2045_s1 = sphi %s2165_s1, %s2601_s1   ;;  %s2041_s19 = sphi %s2163_s19, %s2600_s19   ;;  %s2037_s0 = sphi %s2161_s0, %s2599_s0   ;;  %s2033_s30 = sphi %s2159_s30, %s2598_s30   ;;  %s2029_s29 = sphi %s2157_s29, %s2597_s29   ;;  %s2025_s28 = sphi %s2155_s28, %s2596_s28   ;;  %s2021_s27 = sphi %s2153_s27, %s2595_s27  }
  0x17   : > { %2538 = sst [smem:[#allocation6_spill]] %s2025_s28  ;;  %s1729_s22 = sadd.s32 4294967294, %s2049_s20  }
  0x18   : > { %2539 = sst [smem:[#allocation7_spill]] %s2029_s29  ;;  %s40_s2 = sadd.s32 1, %s2041_s19 }
  0x19   : > { %2540 = sst [smem:[#allocation8_spill]] %s2033_s30  ;;  %p41_p0 = scmp.ge.s32.totalorder %s40_s2, 2 }
  0x1a   : > { %2541 = sst [smem:[#allocation9_spill]] %s2037_s0  ;;  %s43_s23 = sadd.s32 1, %s2045_s1 }
  0x1b   : > { %2542 = sst [smem:[#allocation10_spill]] %s2041_s19  ;;  %p528_p1 = scmp.ne.s32.totalorder %s2029_s29, %s2025_s28 }
  0x1c   : > { %2543 = sst [smem:[#allocation11_spill]] %s2045_s1  ;;  %p529_p2 = scmp.eq.s32.totalorder %s1728_s21, 3 }
  0x1d   : > { %2544 = sst [smem:[#allocation12_spill]] %s2049_s20  ;;  %s2603_s2 = smov (%p41_p0, %s40_s2), 0 }
  0x1e   : > { %2545 = sst [smem:[#allocation13_spill]] %s2603_s2  ;;  %s2605_s23 = smov (!%p41_p0, %s43_s23), %s2045_s1 }
  0x1f   : > { %p2202_p3 = por %p529_p2, %p528_p1  ;;  %p534_p4 = scmp.ne.s32.totalorder %s2025_s28, %s2021_s27 }
  0x20   : > { %p45_p5 = scmp.ge.s32.totalorder %s2605_s23, 2  ;;  %p535_p6 = scmp.eq.s32.totalorder %s1729_s22, 3 }
  0x21   : > { %s2546_s24 = scalar_select %p2202_p3, 1, 0 }
  0x22   : > { %p1732_p7 = scmp.ge.s32.totalorder %s2049_s20, 1  ;;  %p674_p8 = scmp.lt.s32.totalorder %s2049_s20, 5 }
  0x23   : > { %2547 = sst [smem:[#allocation14_spill]] %s2546_s24  ;;  %s2607_s23 = smov (%p45_p5, %s2605_s23), 0 }
  0x24   : > { %2548 = sst [smem:[#allocation15_spill]] %s2607_s23  ;;  %p2212_p9 = por %p535_p6, %p534_p4 }
  0x25   : > { %p675_p10 = pnand %p1732_p7, %p674_p8  ;;  %s515_s26 = ssub.s32 %s2045_s1, %s2607_s23 }
  0x26   : > { %s2549_s25 = scalar_select %p2212_p9, 1, 0 }
  0x27   : > { %s518_s21 = sadd.s32 1, %s2029_s29  ;;  %p516_p11 = scmp.eq.s32.totalorder %s515_s26, 0 }
  0x28   : > { %2550 = sst [smem:[#allocation16_spill]] %s2549_s25  ;;  %678 = sbr.rel (%p675_p10) target bundleno = 2003 (0x7d3), region = 92 }
  0x29   : > { %s2220_s2 = scalar_select %p516_p11, %s2029_s29, %s518_s21  }
  0x2b   : > { %2551 = sst [smem:[#allocation17_spill]] %s2220_s2 }
  0x2d   : > { %s2508_s22 = sand.u32 1, %s2025_s28   ;;  %p790_p12 = scmp.lt.s32.totalorder %s2037_s0, 1 }
  0x2e   : > { %s1733_s19 = sshll.u32 %s2508_s22, 3  ;;  %p797_p13 = scmp.lt.s32.totalorder %s2033_s30, 1 }
  0x2f   : > { %s2228_s27 = scalar_select %p790_p12, %s2037_s0, 1 }
  0x30   : > { %s2231_s23 = scalar_select %p797_p13, %s2033_s30, 1 }
  0x31   : > { %2552 = sst [smem:[#allocation18_spill]] %s2228_s27  ;;  %s1734_s26 = sshll.u32 %s2228_s27, 3 }
  0x32   : > { %s2554_s20 = sld [smem:[#allocation20_spill]]  ;;  %s1823_s18 = sshll.u32 %s2231_s23, 4 }
  0x33   : > { %s2555_s30 = sld [smem:[#allocation22_spill]]  ;;  %s2309_s14 = scalar_lea.vmem [#allocation2], %s1733_s19 }
  0x34   : > { %s2556_s3 = sld [smem:[#allocation23_spill]] }
  0x35   : > { %s2557_s4 = sld [smem:[#allocation24_spill]] }
  0x36   : > { %s2558_s8 = sld [smem:[#allocation25_spill]] }
  0x37   : > { %s2563_s12 = sld [smem:[#allocation29_spill]] }
  0x38   : > { %s793_s24 = scalar_lea.vmem %s2554_s20, %s1734_s26  ;;  %s2564_s22 = sld [smem:[#allocation30_spill]] }
  0x39   : > { %s801_s17 = scalar_lea.vmem %s2555_s30, %s1823_s18  ;;  %s2566_s29 = sld [smem:[#allocation31_spill]] }
  0x3a   : > { %s806_s15 = scalar_lea.vmem %s2556_s3, %s1823_s18  ;;  %s2567_s26 = sld [smem:[#allocation33_spill]] }
  0x3b   : > { %s2251_s2 = scalar_lea.vmem %s2557_s4, %s1823_s18  ;;  %s2565_s4 = sld [smem:[#allocation32_spill]] }
  0x3c   : > { %s2268_s3 = scalar_lea.vmem %s2558_s8, %s1823_s18 }
  0x3d   : > { %2559 = sst [smem:[#allocation19_spill]] %s2268_s3  ;;  %s2285_s30 = scalar_lea.vmem %s2563_s12, %s1823_s18 }
  0x3e   : > { %s842_s8 = scalar_lea.vmem %s2564_s22, %s2231_s23  ;;  %s1828_s3 = sshll.u32 %s2231_s23, 5 }
  0x3f   : > { %s2299_s10 = scalar_lea.vmem %s2566_s29, %s1828_s3  ;;  %s2568_s12 = sld [smem:[#allocation34_spill]] }
  0x40   : > { %s853_s28 = scalar_lea.vmem %s2567_s26, %s2231_s23  ;;  %s2569_s22 = sld [smem:[#allocation8_spill]] }
  0x41   : > { %s850_s9 = scalar_lea.vmem %s2565_s4, %s2231_s23 }
  0x45   : > { %s856_s11 = scalar_lea.vmem %s2568_s12, %s2231_s23 }
  0x46   : > { %p1747_p0 = scmp.ne.s32.totalorder %s2569_s22, 0 }
  0x48   : > { %861 = sbr.rel (%p1747_p0) target bundleno = 79 (0x4f), region = 96 }
  0x4d   : > { %v862_v0 = vld [vmem:[%s793_s24] sm:$0xff]  ;;  %vm863_vm0 = vcmask 261120  }
  0x4e   : > { %864 = vst.msk [vmem:[%s2309_s14] sm:$0xff] %vm863_vm0, %v862_v0 }
  0x4f PF: > { %v1830_v1 = vld [vmem:[%s801_s17 + $0x8] sm:$0xff]  ;;  %v1829_v3 = vld [vmem:[%s801_s17] sm:$0xff]  ;;  %vm889_vm1 = vcmask 261120   ;;  %s2570_s12 = scalar_lea.vmem %s2490_s5, %s2231_s23  ;;  %s2571_s19 = scalar_lea.vmem %s2491_s6, %s2231_s23  ;;  %vm979_vm2 = vcmask 64512   ;;  %vm1014_vm3 = vcmask 1043456   ;;  %vm1221_vm4 = vcmask 130048  }
  0x50   : > { %v1832_v2 = vld [vmem:[%s806_s15 + $0x8] sm:$0xff]  ;;  %v1831_v4 = vld [vmem:[%s806_s15] sm:$0xff]  ;;  %899 = vmatpush.bf16.msra.mxu0 %v1830_v1  ;;  %s2051_s24 = smov 112   ;;  %s2052_s29 = smov 120   ;;  %vm1223_vm5 = vcmask 195584   ;;  %vm1420_vm14 = vcmask 523264  }
  0x51   : > { %933 = vmatpush.bf16.msra.mxu1 %v1832_v2  ;;  %v1921_v7 = vld [vmem:[%s2570_s12] ss:$0 sm:$0xff]  ;;  %s2053_s26 = smov 104   ;;  %s2572_s16 = sld [smem:[#allocation18_spill]]  ;;  %v1834_v23 = vld [vmem:[%s2251_s2 + $0x8] sm:$0xff] }
  0x52   : > { %v1922_v8 = vld [vmem:[%s2571_s19] ss:$0 sm:$0xff]  ;;  %966 = vmatpush.bf16.msra.mxu2 %v1834_v23  ;;  %s2573_s27 = sld [smem:[#allocation21_spill]]  ;;  %s2575_s25 = scalar_lea.vmem %s2492_s7, %s2231_s23 }
  0x53   : > { %v1833_v40 = vld [vmem:[%s2251_s2] sm:$0xff]  ;;  %s2576_s18 = sld [smem:[#allocation19_spill]]  ;;  %s2054_s0 = smov 8  }
  0x54   : > { %900 = vmatpush.bf16.msra.mxu0 %v1829_v3  ;;  %v1923_v58 = vld [vmem:[%s2575_s25] ss:$0 sm:$0xff]  ;;  %s2055_s22 = smov 24   ;;  %s2056_s3 = smov 16  }
  0x55   : > { %v2314_v5 = vld [vmem:[%s2309_s14] sm:$0xff]  ;;  %934 = vmatpush.bf16.msra.mxu1 %v1831_v4  ;;  %s2577_s15 = sld [smem:[#allocation26_spill]] }
  0x56   : > { %v866_v6 = vpack.c.bf16 %v2314_v5, %v2314_v5  ;;  %967 = vmatpush.bf16.msra.mxu2 %v1833_v40  ;;  %s2581_s13 = sld [smem:[#allocation28_spill]] }
  0x57   : > { %s2585_s25 = sld [smem:[#allocation9_spill]] }
  0x58   : > { %1756 = vmatmul.msk.bf16.vlgmr.msra.gmra.mxu0 %vm889_vm1, %v866_v6  ;;  %1765 = vmatmul.msk.bf16.vlgmr.msra.gmra.mxu1 %vm889_vm1, %v866_v6  ;;  %s2574_s21 = scalar_lea.vmem %s2573_s27, %s2572_s16 }
  0x59   : > { %v867_v32 = vld [vmem:[%s2574_s21] sm:$0x1]  ;;  %1774 = vmatmul.msk.bf16.vlgmr.msra.gmra.mxu2 %vm889_vm1, %v866_v6 }
  0x5a   : > { %v868_v33 = vmul.f32 -1e+30, %v867_v32 }
  0x5b   : > { %s2578_s17 = scalar_lea.vmem %s2577_s15, %s2231_s23  ;;  %s2588_s15 = sld [smem:[#allocation35_spill]] }
  0x5c   : > { %v977_v34 = vperm.slane %v868_v33, 0  ;;  %s2582_s1 = scalar_lea.vmem %s2581_s13, %s2231_s23 }
  0xd5   : > { %v902_v9 = vpop.f32.mrf.mxu0  ;;  %v936_v10 = vpop.f32.mrf.mxu1 }
  0xd6   : > { %v903_v11 = vadd.f32 %v1921_v7, %v902_v9  ;;  %v937_v12 = vadd.f32 %v1922_v8, %v936_v10 }
  0xd8   : > { %v906_v13 = vmul.f32 0.35355338, %v903_v11  ;;  %v974_v14 = vpack.c.bf16 %v937_v12, %v937_v12 }
  0xda   : > { %v973_v15 = vpack.c.bf16 %v906_v13, %v906_v13  ;;  %v1037_v16 = vunpack.c.l.b16 %v974_v14  ;;  %v984_v17 = vsel %vm979_vm2, %v974_v14, 0 }
  0xdb   : > { %993 = vmatpush.bf16.xpose.msra.mxu3 %v984_v17 }
  0xdc   : > { %v1032_v18 = vunpack.c.l.b16 %v973_v15  ;;  %v1038_v19 = vpack.c.b16 %v1037_v16, %v1037_v16  ;;  %v969_v59 = vpop.f32.mrf.mxu2 }
  0xdd   : > { %v904_v20 = vpop.f32.mrf.mxu0  ;;  %v938_v21 = vpop.f32.mrf.mxu1  ;;  %v970_v60 = vadd.f32 %v1923_v58, %v969_v59 }
  0xde   : > { %1098 = vrot.lane.b32.xlu1 %v1038_v19, %s2051_s24  ;;  %1039 = vrot.lane.b32.xlu0 %v1038_v19, %s2052_s29  ;;  %v1033_v22 = vpack.c.b16 %v1032_v18, %v1032_v18 }
  0xdf   : > { %v975_v61 = vpack.c.bf16 %v970_v60, %v970_v60 }
  0xe0   : > { %1096 = vrot.lane.b32.xlu2 %v1033_v22, %s2051_s24 }
  0xe1   : > { %v1073_v62 = vunpack.c.l.b16 %v975_v61  ;;  %v1016_v63 = vsel %vm1014_vm3, %v975_v61, 0 }
  0xe2   : > { %1775 = vmatmul.msk.bf16.vlgmr.msra.gmra.mxu3 %vm979_vm2, %v973_v15  ;;  %1025 = vmatpush.bf16.msrb.mxu0 %v1016_v63  ;;  %v2057_v63 = vmov 32.0  }
  0xe3   : > { %v1074_v0 = vpack.c.b16 %v1073_v62, %v1073_v62 }
  0xe4   : > { %v971_v1 = vpop.f32.mrf.mxu2 }
  0xe6   : > { %1154 = vrot.lane.b32.xlu1 %v1038_v19, %s2053_s26  ;;  %1034 = vrot.lane.b32.xlu0 %v1033_v22, %s2052_s29 }
  0xe8   : > { %1152 = vrot.lane.b32.xlu2 %v1033_v22, %s2053_s26 }
 0x13a   : > { %v1097_v28 = vpop.permute.xlu2 %1096 }
 0x142   : > { %v1153_v37 = vpop.permute.xlu2 %1152 }
 0x150   : > { %v1099_v24 = vpop.permute.xlu1 %1098  ;;  %v1040_v25 = vpop.permute.xlu0 %1039 }
 0x151   : > { %v1045_v26 = vsel %vm979_vm2, %v1040_v25, 0  ;;  %v1104_v27 = vsel %vm979_vm2, %v1099_v24, 0 }
 0x152   : > { %1054 = vmatpush.bf16.xpose.msrb.mxu1 %v1045_v26  ;;  %1113 = vmatpush.bf16.xpose.msrb.mxu3 %v1104_v27 }
 0x158   : > { %v1155_v29 = vpop.permute.xlu1 %1154  ;;  %v1035_v30 = vpop.permute.xlu0 %1034 }
 0x159   : > { %v1160_v31 = vsel %vm979_vm2, %v1155_v29, 0  ;;  %1777 = vmatmul.msk.bf16.vlgmr.msrb.gmra.mxu1 %vm979_vm2, %v1035_v30  ;;  %1779 = vmatmul.msk.bf16.vlgmr.msrb.gmra.mxu3 %vm979_vm2, %v1097_v28 }
 0x15a   : > { %1169 = vmatpush.bf16.xpose.msra.mxu1 %v1160_v31 }
 0x165   : > { %v995_v35 = vpop.f32.mrf.mxu3 }
 0x166   : > { %v996_v36 = vadd.f32 %v995_v35, %v977_v34 }
 0x168   : > { %v999_v38 = vsel %vm979_vm2, %v996_v36, -inf }
 0x169   : > { %1781 = vmatmul.msk.bf16.vlgmr.msra.gmra.mxu1 %vm979_vm2, %v1153_v37  ;;  %1000 = vmax.xlane.f32.xlu1 %v999_v38 }
 0x16d   : > { %v997_v39 = vpop.f32.mrf.mxu3 }
 0x1d6   : > { %v1056_v41 = vpop.f32.mrf.mxu1 }
 0x1d7   : > { %v1057_v42 = vadd.f32 %v1056_v41, %v977_v34 }
 0x1d9   : > { %v1060_v43 = vsel %vm979_vm2, %v1057_v42, -inf }
 0x1da   : > { %1061 = vmax.xlane.f32.xlu0 %v1060_v43 }
 0x1dc   : > { %v1115_v44 = vpop.f32.mrf.mxu3  ;;  %v1001_v45 = vpop.xlane.xlu1 %1000 }
 0x1dd   : > { %v1002_v46 = vsub.f32 %v996_v36, %v1001_v45  ;;  %v1116_v55 = vadd.f32 %v1115_v44, %v977_v34 }
 0x1de   : > { %v1058_v47 = vpop.f32.mrf.mxu1 }
 0x1df   : > { %v1003_v48 = vmul.f32 1.442695, %v1002_v46  ;;  %v1119_v57 = vsel %vm979_vm2, %v1116_v55, -inf }
 0x1e1   : > { %1931 = vpow2.f32 %v1003_v48  ;;  %v1836_v48 = vld [vmem:[%s2576_s18 + $0x8] sm:$0xff] }
 0x1e2   : > { %1255 = vmatpush.bf16.msra.mxu3 %v1836_v48 }
 0x1e4   : > { %v1117_v49 = vpop.f32.mrf.mxu3 }
 0x1e5   : > { %v1835_v49 = vld [vmem:[%s2576_s18] sm:$0xff]  ;;  %s2586_s18 = sld [smem:[#allocation6_spill]] }
 0x1e6   : > { %v1171_v50 = vpop.f32.mrf.mxu1  ;;  %1256 = vmatpush.bf16.msra.mxu3 %v1835_v49 }
 0x1e7   : > { %v1932_v51 = vpop.eup %1931  ;;  %v1172_v52 = vadd.f32 %v1171_v50, %v977_v34 }
 0x1e8   : > { %v1005_v53 = vsel %vm979_vm2, %v1932_v51, 0.0 }
 0x1e9   : > { %1006 = vadd.xlane.f32.xlu1 %v1005_v53  ;;  %v1175_v54 = vsel %vm979_vm2, %v1172_v52, -inf }
 0x1ea   : > { %1176 = vmax.xlane.f32.xlu2 %v1175_v54 }
 0x1ee   : > { %v1173_v56 = vpop.f32.mrf.mxu1 }
 0x1f2   : > { %1120 = vmax.xlane.f32.xlu2 %v1119_v57  ;;  %v1924_v57 = vld [vmem:[%s2578_s17] ss:$0 sm:$0xff] }
 0x20a   : > { %1075 = vrot.lane.b32.xlu2 %v1074_v0, %s2052_s29  ;;  %s2579_s29 = sld [smem:[#allocation27_spill]] }
 0x24d   : > { %v1062_v2 = vpop.xlane.xlu0 %1061 }
 0x24e   : > { %v1063_v3 = vsub.f32 %v1057_v42, %v1062_v2 }
 0x250   : > { %v1064_v4 = vmul.f32 1.442695, %v1063_v3 }
 0x252   : > { %1933 = vpow2.f32 %v1064_v4 }
 0x258   : > { %v1934_v6 = vpop.eup %1933 }
 0x259   : > { %v1066_v7 = vsel %vm979_vm2, %v1934_v6, 0.0 }
 0x25a   : > { %1067 = vadd.xlane.f32.xlu0 %v1066_v7 }
 0x25c   : > { %v1007_v8 = vpop.xlane.xlu1 %1006 }
 0x25d   : > { %1935 = vrcp.f32 %v1007_v8  ;;  %v1177_v9 = vpop.xlane.xlu2 %1176 }
 0x25e   : > { %v1178_v10 = vsub.f32 %v1172_v52, %v1177_v9 }
 0x260   : > { %v1179_v11 = vmul.f32 1.442695, %v1178_v10 }
 0x262   : > { %1937 = vpow2.f32 %v1179_v11  ;;  %v1838_v11 = vld [vmem:[%s2285_s30 + $0x8] sm:$0xff] }
 0x263   : > { %v1936_v12 = vpop.eup %1935 }
 0x264   : > { %v1009_v13 = vmul.f32 %v1936_v12, %v1932_v51  ;;  %v1837_v12 = vld [vmem:[%s2285_s30] sm:$0xff]  ;;  %s2580_s30 = scalar_lea.vmem %s2579_s29, %s2231_s23 }
 0x265   : > { %v1121_v14 = vpop.xlane.xlu2 %1120 }
 0x266   : > { %v1122_v15 = vsub.f32 %v1116_v55, %v1121_v14  ;;  %v1010_v16 = vpack.c.bf16 %v1009_v13, %v1009_v13 }
 0x268   : > { %v1938_v17 = vpop.eup %1937  ;;  %v1123_v18 = vmul.f32 1.442695, %v1122_v15  ;;  %1776 = vmatmul.msk.bf16.vlgmr.msrb.gmra.mxu0 %vm979_vm2, %v1010_v16 }
 0x269   : > { %v1181_v19 = vsel %vm979_vm2, %v1938_v17, 0.0 }
 0x26a   : > { %1939 = vpow2.f32 %v1123_v18  ;;  %1182 = vadd.xlane.f32.xlu0 %v1181_v19 }
 0x26d   : > { %v1076_v22 = vpop.permute.xlu2 %1075 }
 0x26e   : > { %v1081_v23 = vsel %vm1014_vm3, %v1076_v22, 0  ;;  %v1925_v22 = vld [vmem:[%s2580_s30] ss:$0 sm:$0xff] }
 0x26f   : > { %1090 = vmatpush.bf16.msrb.mxu2 %v1081_v23 }
 0x270   : > { %v1940_v20 = vpop.eup %1939 }
 0x271   : > { %v1125_v21 = vsel %vm979_vm2, %v1940_v20, 0.0 }
 0x272   : > { %1126 = vadd.xlane.f32.xlu1 %v1125_v21 }
 0x27e   : > { %1187 = vrot.lane.b32.xlu0 %v1074_v0, %s2053_s26  ;;  %s1484_s26 = sshll.u32 %s2309_s14, 4  ;;  %s1485_s26 = int_to_ptr.vmem [resolvable:$true] %s1484_s26 }
 0x28b   : > { %1131 = vrot.lane.b32.xlu1 %v1074_v0, %s2051_s24 }
 0x2cd   : > { %v1068_v24 = vpop.xlane.xlu0 %1067 }
 0x2ce   : > { %1941 = vrcp.f32 %v1068_v24  ;;  %v1926_v24 = vld [vmem:[%s2582_s1] ss:$0 sm:$0xff] }
 0x2d4   : > { %v1942_v25 = vpop.eup %1941 }
 0x2d5   : > { %v1070_v26 = vmul.f32 %v1942_v25, %v1934_v6 }
 0x2d7   : > { %v1071_v27 = vpack.c.bf16 %v1070_v26, %v1070_v26 }
 0x2d9   : > { %1778 = vmatmul.msk.bf16.vlgmr.msrb.gmra.mxu2 %vm979_vm2, %v1071_v27 }
 0x2dd   : > { %v1183_v28 = vpop.xlane.xlu0 %1182 }
 0x2de   : > { %1943 = vrcp.f32 %v1183_v28 }
 0x2e4   : > { %v1944_v30 = vpop.eup %1943 }
 0x2e5   : > { %v1027_v29 = vpop.f32.mrf.mxu0  ;;  %v1185_v32 = vmul.f32 %v1944_v30, %v1938_v17  ;;  %v1127_v33 = vpop.xlane.xlu1 %1126 }
 0x2e6   : > { %1945 = vrcp.f32 %v1127_v33 }
 0x2e7   : > { %v1186_v36 = vpack.c.bf16 %v1185_v32, %v1185_v32  ;;  %1947 = vrcp.f32 %v2057_v63 }
 0x2ec   : > { %v1946_v37 = vpop.eup %1945 }
 0x2ed   : > { %v1029_v31 = vpop.f32.mrf.mxu0  ;;  %v1129_v38 = vmul.f32 %v1946_v37, %v1940_v20  ;;  %v1948_v0 = vpop.eup %1947 }
 0x2ee   : > { %v1269_v1 = vmul.f32 32.0, %v1948_v0  ;;  %vm1273_vm6 = vweird.f32 %v1948_v0 }
 0x2ef   : > { %v1130_v41 = vpack.c.bf16 %v1129_v38, %v1129_v38 }
 0x2f0   : > { %v1188_v34 = vpop.permute.xlu0 %1187  ;;  %v1270_v2 = vsub.f32 1.0, %v1269_v1 }
 0x2f1   : > { %v1193_v35 = vsel %vm1014_vm3, %v1188_v34, 0 }
 0x2f2   : > { %1202 = vmatpush.bf16.msra.mxu2 %v1193_v35  ;;  %v1271_v3 = vmul.f32 %v1948_v0, %v1270_v2 }
 0x2f4   : > { %v1272_v4 = vadd.f32 %v1948_v0, %v1271_v3 }
 0x2f5   : > { %1782 = vmatmul.msk.bf16.vlgmr.msra.gmra.mxu2 %vm979_vm2, %v1186_v36  ;;  %v1842_v36 = vld [vmem:[%s2299_s10 + $0x18] sm:$0xff] }
 0x2f6   : > { %v2387_v6 = vsel %vm1273_vm6, %v1948_v0, %v1272_v4  ;;  %1428 = vmatpush.bf16.msrb.mxu1 %v1842_v36  ;;  %v1930_v36 = vld [vmem:[%s856_s11] ss:$0 sm:$0xff]  ;;  %s1975_s11 = scalar_lea.hbm %s2588_s15, 16 }
 0x2fd   : > { %v1132_v39 = vpop.permute.xlu1 %1131 }
 0x2fe   : > { %v1137_v40 = vsel %vm1014_vm3, %v1132_v39, 0 }
 0x2ff   : > { %1146 = vmatpush.bf16.msra.mxu0 %v1137_v40 }
 0x302   : > { %1780 = vmatmul.msk.bf16.vlgmr.msra.gmra.mxu0 %vm979_vm2, %v1130_v41  ;;  %v1841_v41 = vld [vmem:[%s2299_s10 + $0x10] sm:$0xff] }
 0x303   : > { %1332 = vmatpush.bf16.msrb.mxu0 %v1838_v11  ;;  %1429 = vmatpush.bf16.msrb.mxu1 %v1841_v41 }
 0x307   : > { %1333 = vmatpush.bf16.msrb.mxu0 %v1837_v12 }
 0x35c   : > { %v1092_v42 = vpop.f32.mrf.mxu2 }
 0x35d   : > { %1209 = vrot.lane.b32.xlu2 %v1092_v42, %s2054_s0 }
 0x364   : > { %v1094_v43 = vpop.f32.mrf.mxu2 }
 0x378   : > { %v1204_v44 = vpop.f32.mrf.mxu2 }
 0x379   : > { %1217 = vrot.lane.b32.xlu2 %v1204_v44, %s2055_s22 }
 0x37f   : > { %v1148_v45 = vpop.f32.mrf.mxu0 }
 0x380   : > { %v1206_v46 = vpop.f32.mrf.mxu2  ;;  %1213 = vrot.lane.b32.xlu0 %v1148_v45, %s2056_s3 }
 0x381   : > { %v1840_v46 = vld [vmem:[%s2299_s10 + $0x8] sm:$0xff] }
 0x382   : > { %1430 = vmatpush.bf16.msrb.mxu1 %v1840_v46 }
 0x387   : > { %v1150_v47 = vpop.f32.mrf.mxu0 }
 0x3b7   : > { %v1210_v50 = vpop.permute.xlu2 %1209 }
 0x3b8   : > { %v1220_v51 = vsel %vm979_vm2, %v1027_v29, %v1210_v50  ;;  %v1927_v29 = vld [vmem:[%s842_s8] ss:$0 sm:$0xff] }
 0x3b9   : > { %v1839_v50 = vld [vmem:[%s2299_s10] sm:$0xff] }
 0x3ba   : > { %1431 = vmatpush.bf16.msrb.mxu1 %v1839_v50 }
 0x3d3   : > { %v1218_v53 = vpop.permute.xlu2 %1217 }
 0x3f2   : > { %v1214_v52 = vpop.permute.xlu0 %1213 }
 0x3f3   : > { %v1222_v54 = vsel %vm1221_vm4, %v1220_v51, %v1214_v52 }
 0x3f4   : > { %v1224_v55 = vsel %vm1223_vm5, %v1222_v54, %v1218_v53 }
 0x3f5   : > { %v1225_v56 = vpack.c.bf16 %v1224_v55, %v1224_v55 }
 0x3f7   : > { %1791 = vmatmul.msk.bf16.vlgmr.msra.gmra.mxu3 %vm889_vm1, %v1225_v56 }
 0x47a   : > { %v1258_v58 = vpop.f32.mrf.mxu3 }
 0x47b   : > { %v1259_v59 = vadd.f32 %v1924_v57, %v1258_v58 }
 0x47d   : > { %v1262_v60 = vadd.f32 %v1259_v59, %v2314_v5 }
 0x47f   : > { %v1265_v61 = vsel %vm889_vm1, %v1262_v60, 0.0 }
 0x480   : > { %1266 = vadd.xlane.f32.xlu1 %v1265_v61 }
 0x482   : > { %v1260_v62 = vpop.f32.mrf.mxu3 }
 0x4f3   : > { %v1267_v7 = vpop.xlane.xlu1 %1266 }
 0x4f4   : > { %v1275_v8 = vmul.f32 %v2387_v6, %v1267_v7 }
 0x4f6   : > { %v1276_v5 = vsub.f32 %v1262_v60, %v1275_v8 }
 0x4f8   : > { %v1277_v9 = vmul.f32 %v1276_v5, %v1276_v5 }
 0x4fa   : > { %v1278_v10 = vsel %vm889_vm1, %v1277_v9, 0.0 }
 0x4fb   : > { %1279 = vadd.xlane.f32.xlu0 %v1278_v10 }
 0x56e   : > { %v1280_v13 = vpop.xlane.xlu0 %1279 }
 0x56f   : > { %v1281_v14 = vmul.f32 %v1280_v13, %v2387_v6 }
 0x571   : > { %v1282_v15 = vadd.f32 1e-05, %v1281_v14  ;;  %v1928_v14 = vld [vmem:[%s850_s9] ss:$0 sm:$0xff]  ;;  %s1820_s9 = sshll.u32 %s2585_s25, 3 }
 0x572   : > { %s1482_s17 = scalar_lea.hbm %s2588_s15, %s1820_s9 }
 0x573   : > { %1949 = vrsqrt.f32 %v1282_v15  ;;  %vm1289_vm8 = vweird.f32 %v1282_v15  ;;  %s1486_s16 = sshll.u32 %s1482_s17, 4  ;;  %s1487_s16 = int_to_ptr.hbm [resolvable:$true] %s1486_s16 }
 0x574   : > { %s1969_s1 = sshra.s32 %s1487_s16, 4  ;;  %s1970_s1 = int_to_ptr.hbm [resolvable:$true] %s1969_s1 }
 0x575   : > { %s1971_s27 = scalar_lea.hbm %s1970_s1, 8  ;;  %p1976_p5 = scmp.lt.s32.totalorder %s1970_s1, %s2588_s15 }
 0x576   : > { %p1972_p1 = scmp.ne.s32.totalorder %s1970_s1, %s1971_s27  ;;  %p1977_p6 = scmp.lt.s32.totalorder %s1975_s11, %s1971_s27 }
 0x578   : > { %p1973_p2 = pnand %p1972_p1, %p2202_p3  ;;  %p1978_p7 = por %p1977_p6, %p1976_p5 }
 0x579   : > { %v1950_v16 = vpop.eup %1949 }
 0x57a   : > { %v1284_v17 = vmul.f32 %v1950_v16, %v1282_v15  ;;  %vm1290_vm7 = vweird.f32 %v1950_v16  ;;  %p1974_p4 = pneg %p1973_p2 }
 0x57b   : > { %vm1291_vm9 = vmor %vm1289_vm8, %vm1290_vm7 }
 0x57c   : > { %v1285_v18 = vmul.f32 %v1950_v16, %v1284_v17  ;;  %p1979_p8 = pnand %p1978_p7, %p1974_p4 }
 0x57e   : > { %v1286_v19 = vmul.f32 0.5, %v1285_v18 }
 0x580   : > { %v1287_v20 = vsub.f32 1.5, %v1286_v19 }
 0x582   : > { %v1288_v21 = vmul.f32 %v1950_v16, %v1287_v20 }
 0x584   : > { %v1292_v23 = vsel %vm1291_vm9, %v1950_v16, %v1288_v21 }
 0x585   : > { %v1293_v25 = vmul.f32 %v1292_v23, %v1276_v5 }
 0x587   : > { %v1297_v26 = vmul.f32 %v1925_v22, %v1293_v25 }
 0x589   : > { %v2404_v27 = vadd.f32 %v1926_v24, %v1297_v26 }
 0x58b   : > { %v1302_v28 = vpack.c.bf16 %v2404_v27, %v2404_v27 }
 0x58d   : > { %1800 = vmatmul.msk.bf16.vlgmr.msrb.gmra.mxu0 %vm889_vm1, %v1302_v28 }
 0x60a   : > { %v1335_v30 = vpop.f32.mrf.mxu0 }
 0x60b   : > { %v1336_v31 = vadd.f32 %v1927_v29, %v1335_v30 }
 0x60d   : > { %v1340_v32 = vmul.f32 0.70710677, %v1336_v31  ;;  %v1339_v10 = vmul.f32 0.5, %v1336_v31 }
 0x60f   : > { %v1341_v33 = vmul.f32 %v1340_v32, %v1340_v32 }
 0x611   : > { %v1342_v34 = vmin.f32 %v1341_v33, 16.0 }
 0x612   : > { %v1337_v35 = vpop.f32.mrf.mxu0 }
 0x613   : > { %v1343_v37 = vmul.f32 2.1237322e-06, %v1342_v34  ;;  %v1354_v38 = vmul.f32 3.8918573e-05, %v1342_v34 }
 0x615   : > { %v1344_v39 = vadd.f32 0.00028619796, %v1343_v37  ;;  %v1355_v40 = vadd.f32 0.001143296, %v1354_v38 }
 0x617   : > { %v1345_v42 = vmul.f32 %v1344_v39, %v1342_v34  ;;  %v1356_v43 = vmul.f32 %v1355_v40, %v1342_v34 }
 0x619   : > { %v1357_v44 = vadd.f32 0.014752088, %v1356_v43  ;;  %v1346_v45 = vadd.f32 0.0036580483, %v1345_v42 }
 0x61b   : > { %v1358_v47 = vmul.f32 %v1357_v44, %v1342_v34  ;;  %v1347_v49 = vmul.f32 %v1346_v45, %v1342_v34 }
 0x61d   : > { %v1359_v48 = vadd.f32 0.112945676, %v1358_v47  ;;  %v1348_v53 = vadd.f32 0.05243302, %v1347_v49 }
 0x61f   : > { %v1360_v51 = vmul.f32 %v1359_v48, %v1342_v34  ;;  %v1349_v56 = vmul.f32 %v1348_v53, %v1342_v34 }
 0x621   : > { %v1361_v52 = vadd.f32 0.4994258, %v1360_v51  ;;  %v1350_v57 = vadd.f32 0.18741608, %v1349_v56 }
 0x623   : > { %v1362_v54 = vmul.f32 %v1361_v52, %v1342_v34  ;;  %v1351_v59 = vmul.f32 %v1350_v57, %v1342_v34 }
 0x625   : > { %v1363_v55 = vadd.f32 1.0, %v1362_v54  ;;  %v1352_v63 = vadd.f32 1.1283791, %v1351_v59 }
 0x627   : > { %1951 = vrcp.f32 %v1363_v55  ;;  %v1375_v62 = vand.u32 2147483648, %v1363_v55  ;;  %v1373_v1 = vand.u32 2147483647, %v1363_v55  ;;  %vm1369_vm11 = vweird.f32 %v1363_v55 }
 0x628   : > { %v1353_v4 = vmul.f32 %v1352_v63, %v1340_v32 }
 0x629   : > { %v1376_v3 = vor.u32 1.1754944e-38, %v1375_v62  ;;  %vm1374_vm13 = vcmp.eq.f32.partialorder %v1373_v1, 8.507059e+37 }
 0x62d   : > { %v1952_v58 = vpop.eup %1951 }
 0x62e   : > { %v1365_v60 = vmul.f32 %v1952_v58, %v1363_v55  ;;  %vm1370_vm10 = vweird.f32 %v1952_v58 }
 0x62f   : > { %vm1371_vm12 = vmor %vm1369_vm11, %vm1370_vm10 }
 0x630   : > { %v1366_v61 = vsub.f32 1.0, %v1365_v60 }
 0x632   : > { %v1367_v0 = vmul.f32 %v1952_v58, %v1366_v61 }
 0x634   : > { %v1368_v2 = vadd.f32 %v1952_v58, %v1367_v0 }
 0x636   : > { %v1372_v7 = vsel %vm1371_vm12, %v1952_v58, %v1368_v2 }
 0x637   : > { %v1377_v8 = vsel %vm1374_vm13, %v1376_v3, %v1372_v7 }
 0x638   : > { %v1378_v5 = vmul.f32 %v1377_v8, %v1353_v4 }
 0x63a   : > { %v1801_v9 = vclamps-f32 %v1378_v5, 1.0 }
 0x63c   : > { %v1381_v11 = vadd.f32 1.0, %v1801_v9 }
 0x63e   : > { %v1382_v12 = vmul.f32 %v1381_v11, %v1339_v10 }
 0x640   : > { %v1383_v13 = vpack.c.bf16 %v1382_v12, %v1382_v12 }
 0x642   : > { %1818 = vmatmul.msk.bf16.vlgmr.msrb.gmra.mxu1 %vm1420_vm14, %v1383_v13 }
 0x6bf   : > { %v1433_v15 = vpop.f32.mrf.mxu1 }
 0x6c0   : > { %v1434_v16 = vadd.f32 %v1928_v14, %v1433_v15 }
 0x6c2   : > { %v1437_v17 = vadd.f32 %v1434_v16, %v2404_v27 }
 0x6c4   : > { %v1440_v18 = vsel %vm889_vm1, %v1437_v17, 0.0 }
 0x6c5   : > { %1441 = vadd.xlane.f32.xlu2 %v1440_v18 }
 0x6c7   : > { %v1435_v19 = vpop.f32.mrf.mxu1 }
 0x738   : > { %v1442_v20 = vpop.xlane.xlu2 %1441 }
 0x739   : > { %v1443_v21 = vmul.f32 %v1442_v20, %v2387_v6 }
 0x73b   : > { %v1444_v22 = vsub.f32 %v1437_v17, %v1443_v21 }
 0x73d   : > { %v1445_v23 = vmul.f32 %v1444_v22, %v1444_v22 }
 0x73f   : > { %v1446_v24 = vsel %vm889_vm1, %v1445_v23, 0.0 }
 0x740   : > { %1447 = vadd.xlane.f32.xlu1 %v1446_v24 }
 0x7b3   : > { %v1448_v25 = vpop.xlane.xlu1 %1447 }
 0x7b4   : > { %v1449_v26 = vmul.f32 %v1448_v25, %v2387_v6  ;;  %v1929_v6 = vld [vmem:[%s853_s28] ss:$0 sm:$0xff]  ;;  %s2591_s28 = sand.u32 1, %s2586_s18  }
 0x7b5   : > { %s1472_s13 = scalar_lea.sflag [#allocation3], %s2591_s28 }
 0x7b6   : > { %v1450_v28 = vadd.f32 1e-05, %v1449_v26 }
 0x7b8   : > { %1953 = vrsqrt.f32 %v1450_v28  ;;  %vm1457_vm0 = vweird.f32 %v1450_v28 }
 0x7be   : > { %v1954_v27 = vpop.eup %1953 }
 0x7bf   : > { %v1452_v29 = vmul.f32 %v1954_v27, %v1450_v28  ;;  %vm1458_vm15 = vweird.f32 %v1954_v27 }
 0x7c0   : > { %vm1459_vm2 = vmor %vm1457_vm0, %vm1458_vm15 }
 0x7c1   : > { %v1453_v30 = vmul.f32 %v1954_v27, %v1452_v29 }
 0x7c3   : > { %v1454_v31 = vmul.f32 0.5, %v1453_v30 }
 0x7c5   : > { %v1455_v32 = vsub.f32 1.5, %v1454_v31 }
 0x7c7   : > { %v1456_v33 = vmul.f32 %v1954_v27, %v1455_v32 }
 0x7c9   : > { %v1460_v34 = vsel %vm1459_vm2, %v1954_v27, %v1456_v33 }
 0x7ca   : > { %v1461_v35 = vmul.f32 %v1460_v34, %v1444_v22 }
 0x7cc   : > { %v1465_v37 = vmul.f32 %v1929_v6, %v1461_v35 }
 0x7ce   : > { %v1469_v38 = vadd.f32 %v1930_v36, %v1465_v37 }
 0x7d0   : > { %1470 = vst.msk [vmem:[%s2309_s14] sm:$0xff] %vm889_vm1, %v1469_v38 }
 0x7d1   : > { %1982 = shalt.err (!%p1979_p8)
}
 0x7d2   : > { %1843 = dma.vmem_to_hbm [thread:$0]  (%p2202_p3), %s1485_s26, 128, %s1487_s16, %s1472_s13  }
 0x7d3 PF: > { %s2592_s14 = sld [smem:[#allocation12_spill]] }
 0x7d4   : > { %s2593_s10 = sld [smem:[#allocation5_spill]] }
 0x7d9   : > { %p1849_p10 = scmp.ge.s32.totalorder %s2592_s14, 2 }
 0x7da   : > { %s1498_s25 = sand.u32 1, %s2593_s10  }
 0x7db   : > { %p1846_p11 = pnand %p1849_p10, %p2212_p9  ;;  %s1499_s9 = scalar_lea.sflag [#allocation3], %s1498_s25 }
 0x7dd   : > { %p1847_p12 = pneg %p1846_p11 }
 0x7df   : > { %2016 = dma.done.wait (%p1847_p12), %s1499_s9, 128  }
 0x7e0   : > { %2018 = vsyncadd (%p1847_p12), %s1499_s9, 4294967168  ;;  %s31_s20 = sadd.s32 1, %s2592_s14   ;;  %s2595_s27 = sld [smem:[#allocation6_spill]] }
 0x7e1   : > { %p28_p13 = scmp.ge.s32.totalorder %s31_s20, 6   ;;  %s2596_s28 = sld [smem:[#allocation7_spill]] }
 0x7e2   : > { %s2597_s29 = sld [smem:[#allocation17_spill]] }
 0x7e3   : > { %s2598_s30 = sld [smem:[#allocation10_spill]]  ;;  %30 = sbr.rel (!%p28_p13) target bundleno = 22 (0x16), region = 182 }
 0x7e4   : > { %s2599_s0 = sld [smem:[#allocation11_spill]] }
 0x7e5   : > { %s2600_s19 = sld [smem:[#allocation13_spill]] }
 0x7e6   : > { %s2601_s1 = sld [smem:[#allocation15_spill]] }
 0x7e8   :  { %1505 = vsyncpa [#allocation3], 1 }
 0x7e9   :  { %1507 = vsyncpa [#allocation3 + $0x1], 1 }

</bundles_post_ra>
